<compile_context>
chip_gen: v5e
topology: v5e:2x2
jax: 0.10.0
libtpu: 0.0.40
codegen_flags: <defaults>
</compile_context>

<pallas_src>
import functools

import jax
import jax.numpy as jnp
import numpy as np
from jax.experimental import pallas as pl
from jax.experimental.pallas import tpu as pltpu


# ----------------------------------------------------------------------------
# Kernel
# ----------------------------------------------------------------------------
def encoder_kernel(gxf_ref, gxb_ref, whf_ref, whb_ref, bnf_ref, bnb_ref,
                   wfcf_ref, wfcb_ref, bfc_ref,
                   outf_ref, outb_ref, hid_ref,
                   hf_sc, hb_sc, *, C, B, H):
    """One grid step = one chunk of C timesteps for BOTH directions.

    gxf_ref : (C, B, 3H)  fwd input projections for global times [i*C, i*C+C)
    gxb_ref : (C, B, 3H)  bwd input projections for global times
                          [(nc-1-i)*C, (nc-1-i)*C + C)  (index_map-mirrored)
    whf/whb : (H, 3H)     recurrent weights (transposed), layout [r|z|n]
    bnf/bnb : (1, H)      b_hh_n (cannot be folded: sits inside r*(...))
    wfcf/wfcb: (H, D), bfc: (1, D)
    outf_ref: (C, B, H)   fwd hidden per step (block i)
    outb_ref: (C, B, H)   bwd hidden per step (block nc-1-i)
    hid_ref : (B, D)      final tanh(fc(...)), written on last grid iteration
    hf_sc/hb_sc: (B, H)   hidden-state carry across grid iterations
    """
    i = pl.program_id(0)
    nc = pl.num_programs(0)

    @pl.when(i == 0)
    def _():
        hf_sc[...] = jnp.zeros_like(hf_sc)
        hb_sc[...] = jnp.zeros_like(hb_sc)

    # Loop-invariant loads / broadcasts hoisted out of the recurrence
    # (JAX does not CSE broadcast_in_dim inside the loop).
    whf = whf_ref[...]
    whb = whb_ref[...]
    bnf = jnp.broadcast_to(bnf_ref[...], (B, H))
    bnb = jnp.broadcast_to(bnb_ref[...], (B, H))

    def cell(h, gx, wh, bn):
        # gx already contains W_ih x + b_ih (+ b_hh_{r,z} folded).
        gh = jnp.dot(h, wh, preferred_element_type=jnp.float32)      # (B, 3H)
        r = jax.nn.sigmoid(gx[:, 0:H] + gh[:, 0:H])
        z = jax.nn.sigmoid(gx[:, H:2 * H] + gh[:, H:2 * H])
        n = jnp.tanh(gx[:, 2 * H:3 * H] + r * (gh[:, 2 * H:3 * H] + bn))
        return (1.0 - z) * n + z * h

    def step(j, carry):
        hf, hb = carry
        # fwd processes local time j; bwd processes local time C-1-j of its
        # (mirrored) chunk => globally t = T-1, T-2, ..., 0 across the grid.
        hf = cell(hf, gxf_ref[j], whf, bnf)
        hb = cell(hb, gxb_ref[C - 1 - j], whb, bnb)
        outf_ref[j] = hf
        outb_ref[C - 1 - j] = hb
        return (hf, hb)

    hf, hb = jax.lax.fori_loop(0, C, step, (hf_sc[...], hb_sc[...]),
                               unroll=min(C, 8))   # partial unroll: no vreg blow-up

    hf_sc[...] = hf
    hb_sc[...] = hb

    # hidden = tanh(cat(h_fwd_final, h_bwd_final) @ W_fc^T + b_fc), computed as
    # two dots to avoid an in-kernel lane concat.
    @pl.when(i == nc - 1)
    def _():
        hid_ref[...] = jnp.tanh(
            jnp.dot(hf, wfcf_ref[...], preferred_element_type=jnp.float32)
            + jnp.dot(hb, wfcb_ref[...], preferred_element_type=jnp.float32)
            + bfc_ref[...])


# ----------------------------------------------------------------------------
# VMEM sizing / chunk selection
# ----------------------------------------------------------------------------
def _tile_padded_bytes(shape, itemsize=4):
    """Conservative VMEM footprint: pad the last two dims to (8, 128) tiles."""
    s = list(shape)
    if len(s) == 1:
        s = [1] + s
    s[-1] = -(-s[-1] // 128) * 128
    s[-2] = -(-s[-2] // 8) * 8
    return int(np.prod(s)) * itemsize


def _estimate_vmem_bytes(C, B, H, D):
    est = 0
    # double-buffered pipelined inputs / outputs
    for shp in [(C, B, 3 * H), (C, B, 3 * H), (C, B, H), (C, B, H)]:
        est += 2 * _tile_padded_bytes(shp)
    # weights / biases / final hidden (small; count x2 conservatively)
    for shp in [(H, 3 * H), (H, 3 * H), (1, H), (1, H),
                (H, D), (H, D), (1, D), (B, D)]:
        est += 2 * _tile_padded_bytes(shp)
    # scratch carries
    est += 2 * _tile_padded_bytes((B, H))
    return est


def _choose_chunk(T, B, H, D, target=32, limit_bytes=48 * 1024 * 1024):
    """Largest divisor of T that is <= target and fits the VMEM budget."""
    best = 1
    for c in range(1, T + 1):
        if T % c:
            continue
        if c <= target and _estimate_vmem_bytes(c, B, H, D) <= limit_bytes:
            best = c
    return best


# ----------------------------------------------------------------------------
# Wrapper
# ----------------------------------------------------------------------------
def encoder_forward(src, params, *, emb_dim, enc_hid, dec_hid):
    T, B = src.shape
    E, H, D = emb_dim, enc_hid, dec_hid
    H2, H3 = 2 * H, 3 * H

    # Embedding lookup (glue, plain JAX). Dropout == identity (eval mode).
    emb = jnp.take(params["embedding"], src, axis=0)              # (T, B, E)
    x2d = emb.reshape(T * B, E)

    # Fold b_ih and the r/z parts of b_hh into one bias per direction (legal:
    # they sit outside the r-gate product). One well-shaped matmul each; no
    # 6-way concat, no [::-1] reverse (handled by BlockSpec index_maps).
    bias_f = params["b_ih_f"].at[:, :H2].add(params["b_hh_f"][:, :H2])
    bias_b = params["b_ih_b"].at[:, :H2].add(params["b_hh_b"][:, :H2])
    gx_f = (x2d @ params["w_ih_f_t"] + bias_f).reshape(T, B, H3)
    gx_b = (x2d @ params["w_ih_b_t"] + bias_b).reshape(T, B, H3)

    bhn_f = params["b_hh_f"][:, H2:H3]                            # (1, H)
    bhn_b = params["b_hh_b"][:, H2:H3]                            # (1, H)
    wfc_f = params["w_fc_t"][:H]                                  # (H, D)
    wfc_b = params["w_fc_t"][H:]                                  # (H, D)

    # Chunked-T streaming: pick the biggest chunk that keeps the double-
    # buffered working set comfortably inside VMEM (48 MiB budget -> safe on
    # v7x's 64 MiB as well as v5e/v6e).
    C = _choose_chunk(T, B, H, D)
    nc = T // C
    est = _estimate_vmem_bytes(C, B, H, D)
    if est > 56 * 1024 * 1024:
        raise ValueError(f"chunked working set ({est} B) does not fit VMEM")
    vmem_limit = int(min(max(est + 8 * 1024 * 1024, 16 * 1024 * 1024),
                         56 * 1024 * 1024))

    grid_spec = pltpu.PrefetchScalarGridSpec(
        num_scalar_prefetch=0,
        grid=(nc,),
        in_specs=[
            pl.BlockSpec((C, B, H3), lambda i: (i, 0, 0)),            # gx_f
            pl.BlockSpec((C, B, H3), lambda i: (nc - 1 - i, 0, 0)),   # gx_b
            pl.BlockSpec((H, H3), lambda i: (0, 0)),                  # whh_f
            pl.BlockSpec((H, H3), lambda i: (0, 0)),                  # whh_b
            pl.BlockSpec((1, H), lambda i: (0, 0)),                   # bhn_f
            pl.BlockSpec((1, H), lambda i: (0, 0)),                   # bhn_b
            pl.BlockSpec((H, D), lambda i: (0, 0)),                   # wfc_f
            pl.BlockSpec((H, D), lambda i: (0, 0)),                   # wfc_b
            pl.BlockSpec((1, D), lambda i: (0, 0)),                   # bfc
        ],
        out_specs=[
            pl.BlockSpec((C, B, H), lambda i: (i, 0, 0)),             # out_fwd
            pl.BlockSpec((C, B, H), lambda i: (nc - 1 - i, 0, 0)),    # out_bwd
            pl.BlockSpec((B, D), lambda i: (0, 0)),                   # hidden
        ],
        scratch_shapes=[
            pltpu.VMEM((B, H), jnp.float32),   # h_fwd carry
            pltpu.VMEM((B, H), jnp.float32),   # h_bwd carry
        ],
    )

    out_f, out_b, hidden = pl.pallas_call(
        functools.partial(encoder_kernel, C=C, B=B, H=H),
        grid_spec=grid_spec,
        out_shape=[
            jax.ShapeDtypeStruct((T, B, H), jnp.float32),
            jax.ShapeDtypeStruct((T, B, H), jnp.float32),
            jax.ShapeDtypeStruct((B, D), jnp.float32),
        ],
        compiler_params=pltpu.CompilerParams(
            dimension_semantics=("arbitrary",),   # sequential h carry
            vmem_limit_bytes=vmem_limit),
    )(gx_f, gx_b,
      params["w_hh_f_t"], params["w_hh_b_t"],
      bhn_f, bhn_b, wfc_f, wfc_b, params["b_fc"])

    # torch GRU output layout: [..., :H] = fwd, [..., H:] = bwd.
    outputs = jnp.concatenate([out_f, out_b], axis=-1)            # (T, B, 2H)
    return outputs, hidden


# ----------------------------------------------------------------------------
# Pure-JAX reference mirroring torch semantics
# ----------------------------------------------------------------------------
def encoder_reference(src, params, *, emb_dim, enc_hid, dec_hid):
    T, B = src.shape
    H = enc_hid
    emb = jnp.take(params["embedding"], src, axis=0)

    def cell(h, x, wi, wh, bi, bh):
        gx = x @ wi + bi
        gh = h @ wh + bh
        r = jax.nn.sigmoid(gx[:, :H] + gh[:, :H])
        z = jax.nn.sigmoid(gx[:, H:2 * H] + gh[:, H:2 * H])
        n = jnp.tanh(gx[:, 2 * H:] + r * gh[:, 2 * H:])
        return (1.0 - z) * n + z * h

    hf = jnp.zeros((B, H), jnp.float32)
    hb = jnp.zeros((B, H), jnp.float32)
    outs_f, outs_b = [], [None] * T
    for t in range(T):
        hf = cell(hf, emb[t], params["w_ih_f_t"], params["w_hh_f_t"],
                  params["b_ih_f"], params["b_hh_f"])
        outs_f.append(hf)
    for t in range(T - 1, -1, -1):
        hb = cell(hb, emb[t], params["w_ih_b_t"], params["w_hh_b_t"],
                  params["b_ih_b"], params["b_hh_b"])
        outs_b[t] = hb
    outputs = jnp.concatenate([jnp.stack(outs_f), jnp.stack(outs_b)], axis=-1)
    hidden = jnp.tanh(jnp.concatenate([hf, hb], axis=-1) @ params["w_fc_t"]
                      + params["b_fc"])
    return outputs, hidden


def make_params(key, vocab, E, H, D):
    ks = jax.random.split(key, 11)
    s = 1.0 / np.sqrt(H)
    u = lambda k, shape: jax.random.uniform(k, shape, jnp.float32, -s, s)
    return {
        "embedding": jax.random.normal(ks[0], (vocab, E), jnp.float32),
        # transposed weights: x(B,E) @ W_ih^T(E,3H), h(B,H) @ W_hh^T(H,3H)
        "w_ih_f_t": u(ks[1], (E, 3 * H)),
        "w_hh_f_t": u(ks[2], (H, 3 * H)),
        "b_ih_f": u(ks[3], (1, 3 * H)),
        "b_hh_f": u(ks[4], (1, 3 * H)),
        "w_ih_b_t": u(ks[5], (E, 3 * H)),
        "w_hh_b_t": u(ks[6], (H, 3 * H)),
        "b_ih_b": u(ks[7], (1, 3 * H)),
        "b_hh_b": u(ks[8], (1, 3 * H)),
        "w_fc_t": u(ks[9], (2 * H, D)),    # fc: (B,2H) @ W_fc^T(2H,D)
        "b_fc": u(ks[10], (1, D)),
    }


if __name__ == "__main__":
    VOCAB, E, H, D = 16, 8, 16, 16   # input_dim, emb_dim, enc_hid_dim, dec_hid_dim
    T, B = 8, 2                      # seq_len, batch

    key = jax.random.PRNGKey(0)
    kp, ks = jax.random.split(key)
    params = make_params(kp, VOCAB, E, H, D)
    src = jax.random.randint(ks, (T, B), 0, VOCAB, dtype=jnp.int32)

    outputs, hidden = encoder_forward(src, params, emb_dim=E, enc_hid=H, dec_hid=D)
    jax.block_until_ready((outputs, hidden))

    ref_out, ref_hid = encoder_reference(src, params, emb_dim=E, enc_hid=H, dec_hid=D)
    np.testing.assert_allclose(np.asarray(outputs), np.asarray(ref_out),
                               rtol=1e-5, atol=1e-5)
    np.testing.assert_allclose(np.asarray(hidden), np.asarray(ref_hid),
                               rtol=1e-5, atol=1e-5)

    assert outputs.shape == (T, B, 2 * H)
    assert hidden.shape == (B, D)
    print("KERNEL_OK")
</pallas_src>

<mosaic_0001>
module attributes {stable_mosaic.version = 11 : i64} {
  func.func @encoder_kernel(%arg0: i32, %arg1: memref<8x2x48xf32, #tpu.memory_space<vmem>>, %arg2: memref<8x2x48xf32, #tpu.memory_space<vmem>>, %arg3: memref<16x48xf32, #tpu.memory_space<vmem>>, %arg4: memref<16x48xf32, #tpu.memory_space<vmem>>, %arg5: memref<1x16xf32, #tpu.memory_space<vmem>>, %arg6: memref<1x16xf32, #tpu.memory_space<vmem>>, %arg7: memref<16x16xf32, #tpu.memory_space<vmem>>, %arg8: memref<16x16xf32, #tpu.memory_space<vmem>>, %arg9: memref<1x16xf32, #tpu.memory_space<vmem>>, %arg10: memref<8x2x16xf32, #tpu.memory_space<vmem>>, %arg11: memref<8x2x16xf32, #tpu.memory_space<vmem>>, %arg12: memref<2x16xf32, #tpu.memory_space<vmem>>, %arg13: memref<2x16xf32, #tpu.memory_space<vmem>>, %arg14: memref<2x16xf32, #tpu.memory_space<vmem>>) attributes {dimension_semantics = [#tpu.dimension_semantics<arbitrary>], iteration_bounds = array<i64: 1>, scalar_prefetch = 0 : i64, scratch_operands = 2 : i64, tpu.core_type = #tpu.core_type<tc>, window_params = [{transform_indices = @transform_0, window_bounds = array<i64: 8, 2, 48>}, {transform_indices = @transform_1, window_bounds = array<i64: 8, 2, 48>}, {pipeline_mode = #tpu.pipeline_mode<synchronous>, transform_indices = @transform_2, window_bounds = array<i64: 16, 48>}, {pipeline_mode = #tpu.pipeline_mode<synchronous>, transform_indices = @transform_3, window_bounds = array<i64: 16, 48>}, {pipeline_mode = #tpu.pipeline_mode<synchronous>, transform_indices = @transform_4, window_bounds = array<i64: 1, 16>}, {pipeline_mode = #tpu.pipeline_mode<synchronous>, transform_indices = @transform_5, window_bounds = array<i64: 1, 16>}, {pipeline_mode = #tpu.pipeline_mode<synchronous>, transform_indices = @transform_6, window_bounds = array<i64: 16, 16>}, {pipeline_mode = #tpu.pipeline_mode<synchronous>, transform_indices = @transform_7, window_bounds = array<i64: 16, 16>}, {pipeline_mode = #tpu.pipeline_mode<synchronous>, transform_indices = @transform_8, window_bounds = array<i64: 1, 16>}, {transform_indices = @transform_9, window_bounds = array<i64: 8, 2, 16>}, {transform_indices = @transform_10, window_bounds = array<i64: 8, 2, 16>}, {pipeline_mode = #tpu.pipeline_mode<synchronous>, transform_indices = @transform_11, window_bounds = array<i64: 2, 16>}]} {
    %c0_i32 = arith.constant 0 : i32
    %0 = arith.cmpi eq, %arg0, %c0_i32 : i32
    %1 = arith.extui %0 : i1 to i32
    %c0_i32_0 = arith.constant 0 : i32
    %2 = arith.cmpi ne, %1, %c0_i32_0 : i32
    scf.if %2 {
      %cst_162 = arith.constant 0.000000e+00 : f32
      %594 = vector.broadcast %cst_162 : f32 to vector<2x16xf32>
      %c0_163 = arith.constant 0 : index
      %c0_164 = arith.constant 0 : index
      %595 = vector.load %arg13[%c0_163, %c0_164] : memref<2x16xf32, #tpu.memory_space<vmem>>, vector<2x16xf32>
      tpu.vector_store %arg13[%c0_163, %c0_164], %594 {strides = array<i32>} : memref<2x16xf32, #tpu.memory_space<vmem>>, vector<2x16xf32>,
      %cst_165 = arith.constant 0.000000e+00 : f32
      %596 = vector.broadcast %cst_165 : f32 to vector<2x16xf32>
      %c0_166 = arith.constant 0 : index
      %c0_167 = arith.constant 0 : index
      %597 = vector.load %arg14[%c0_166, %c0_167] : memref<2x16xf32, #tpu.memory_space<vmem>>, vector<2x16xf32>
      tpu.vector_store %arg14[%c0_166, %c0_167], %596 {strides = array<i32>} : memref<2x16xf32, #tpu.memory_space<vmem>>, vector<2x16xf32>,
    } else {
    }
    %c0 = arith.constant 0 : index
    %c0_1 = arith.constant 0 : index
    %3 = vector.load %arg3[%c0, %c0_1] : memref<16x48xf32, #tpu.memory_space<vmem>>, vector<16x48xf32>
    %c0_2 = arith.constant 0 : index
    %c0_3 = arith.constant 0 : index
    %4 = vector.load %arg4[%c0_2, %c0_3] : memref<16x48xf32, #tpu.memory_space<vmem>>, vector<16x48xf32>
    %c0_4 = arith.constant 0 : index
    %c0_5 = arith.constant 0 : index
    %5 = vector.load %arg5[%c0_4, %c0_5] : memref<1x16xf32, #tpu.memory_space<vmem>>, vector<1x16xf32>
    %6 = vector.shape_cast %5 : vector<1x16xf32> to vector<1x16xf32>
    %7 = vector.broadcast %6 : vector<1x16xf32> to vector<2x16xf32>
    %c0_6 = arith.constant 0 : index
    %c0_7 = arith.constant 0 : index
    %8 = vector.load %arg6[%c0_6, %c0_7] : memref<1x16xf32, #tpu.memory_space<vmem>>, vector<1x16xf32>
    %9 = vector.shape_cast %8 : vector<1x16xf32> to vector<1x16xf32>
    %10 = vector.broadcast %9 : vector<1x16xf32> to vector<2x16xf32>
    %c0_8 = arith.constant 0 : index
    %c0_9 = arith.constant 0 : index
    %11 = vector.load %arg13[%c0_8, %c0_9] : memref<2x16xf32, #tpu.memory_space<vmem>>, vector<2x16xf32>
    %c0_10 = arith.constant 0 : index
    %c0_11 = arith.constant 0 : index
    %12 = vector.load %arg14[%c0_10, %c0_11] : memref<2x16xf32, #tpu.memory_space<vmem>>, vector<2x16xf32>
    %c0_i32_12 = arith.constant 0 : i32
    %13 = arith.index_cast %c0_i32_12 : i32 to index
    %c0_13 = arith.constant 0 : index
    %c0_14 = arith.constant 0 : index
    %14 = vector.load %arg1[%13, %c0_13, %c0_14] : memref<8x2x48xf32, #tpu.memory_space<vmem>>, vector<1x2x48xf32>
    %15 = vector.shape_cast %14 : vector<1x2x48xf32> to vector<2x48xf32>
    %cst = arith.constant dense<0.000000e+00> : vector<2x48xf32>
    %16 = tpu.matmul %11, %3, %cst {dimension_numbers = #tpu.dot_dimension_numbers<[1], [0], [0], [1], [0, 0, 1, 1], [], []>} : vector<2x16xf32>, vector<16x48xf32>, vector<2x48xf32> -> vector<2x48xf32>
    %17 = vector.extract_strided_slice %15 {offsets = [0, 0], sizes = [2, 16], strides = [1, 1]} : vector<2x48xf32> to vector<2x16xf32>
    %18 = vector.extract_strided_slice %16 {offsets = [0, 0], sizes = [2, 16], strides = [1, 1]} : vector<2x48xf32> to vector<2x16xf32>
    %19 = arith.addf %17, %18 : vector<2x16xf32>
    %20 = arith.negf %19 : vector<2x16xf32>
    %21 = math.exp %20 : vector<2x16xf32>
    %cst_15 = arith.constant 1.000000e+00 : f32
    %22 = vector.broadcast %cst_15 : f32 to vector<2x16xf32>
    %23 = arith.addf %22, %21 : vector<2x16xf32>
    %24 = arith.divf %22, %23 : vector<2x16xf32>
    %25 = vector.extract_strided_slice %15 {offsets = [0, 16], sizes = [2, 16], strides = [1, 1]} : vector<2x48xf32> to vector<2x16xf32>
    %26 = vector.extract_strided_slice %16 {offsets = [0, 16], sizes = [2, 16], strides = [1, 1]} : vector<2x48xf32> to vector<2x16xf32>
    %27 = arith.addf %25, %26 : vector<2x16xf32>
    %28 = arith.negf %27 : vector<2x16xf32>
    %29 = math.exp %28 : vector<2x16xf32>
    %cst_16 = arith.constant 1.000000e+00 : f32
    %30 = vector.broadcast %cst_16 : f32 to vector<2x16xf32>
    %31 = arith.addf %30, %29 : vector<2x16xf32>
    %32 = arith.divf %30, %31 : vector<2x16xf32>
    %33 = vector.extract_strided_slice %15 {offsets = [0, 32], sizes = [2, 16], strides = [1, 1]} : vector<2x48xf32> to vector<2x16xf32>
    %34 = vector.extract_strided_slice %16 {offsets = [0, 32], sizes = [2, 16], strides = [1, 1]} : vector<2x48xf32> to vector<2x16xf32>
    %35 = arith.addf %34, %7 : vector<2x16xf32>
    %36 = arith.mulf %24, %35 : vector<2x16xf32>
    %37 = arith.addf %33, %36 : vector<2x16xf32>
    %38 = math.tanh %37 : vector<2x16xf32>
    %cst_17 = arith.constant 1.000000e+00 : f32
    %39 = vector.broadcast %cst_17 : f32 to vector<2x16xf32>
    %40 = arith.subf %39, %32 : vector<2x16xf32>
    %41 = arith.mulf %40, %38 : vector<2x16xf32>
    %42 = arith.mulf %32, %11 : vector<2x16xf32>
    %43 = arith.addf %41, %42 : vector<2x16xf32>
    %c7_i32 = arith.constant 7 : i32
    %44 = arith.subi %c7_i32, %c0_i32_12 : i32
    %45 = arith.index_cast %44 : i32 to index
    %c0_18 = arith.constant 0 : index
    %c0_19 = arith.constant 0 : index
    %46 = vector.load %arg2[%45, %c0_18, %c0_19] : memref<8x2x48xf32, #tpu.memory_space<vmem>>, vector<1x2x48xf32>
    %47 = vector.shape_cast %46 : vector<1x2x48xf32> to vector<2x48xf32>
    %cst_20 = arith.constant dense<0.000000e+00> : vector<2x48xf32>
    %48 = tpu.matmul %12, %4, %cst_20 {dimension_numbers = #tpu.dot_dimension_numbers<[1], [0], [0], [1], [0, 0, 1, 1], [], []>} : vector<2x16xf32>, vector<16x48xf32>, vector<2x48xf32> -> vector<2x48xf32>
    %49 = vector.extract_strided_slice %47 {offsets = [0, 0], sizes = [2, 16], strides = [1, 1]} : vector<2x48xf32> to vector<2x16xf32>
    %50 = vector.extract_strided_slice %48 {offsets = [0, 0], sizes = [2, 16], strides = [1, 1]} : vector<2x48xf32> to vector<2x16xf32>
    %51 = arith.addf %49, %50 : vector<2x16xf32>
    %52 = arith.negf %51 : vector<2x16xf32>
    %53 = math.exp %52 : vector<2x16xf32>
    %cst_21 = arith.constant 1.000000e+00 : f32
    %54 = vector.broadcast %cst_21 : f32 to vector<2x16xf32>
    %55 = arith.addf %54, %53 : vector<2x16xf32>
    %56 = arith.divf %54, %55 : vector<2x16xf32>
    %57 = vector.extract_strided_slice %47 {offsets = [0, 16], sizes = [2, 16], strides = [1, 1]} : vector<2x48xf32> to vector<2x16xf32>
    %58 = vector.extract_strided_slice %48 {offsets = [0, 16], sizes = [2, 16], strides = [1, 1]} : vector<2x48xf32> to vector<2x16xf32>
    %59 = arith.addf %57, %58 : vector<2x16xf32>
    %60 = arith.negf %59 : vector<2x16xf32>
    %61 = math.exp %60 : vector<2x16xf32>
    %cst_22 = arith.constant 1.000000e+00 : f32
    %62 = vector.broadcast %cst_22 : f32 to vector<2x16xf32>
    %63 = arith.addf %62, %61 : vector<2x16xf32>
    %64 = arith.divf %62, %63 : vector<2x16xf32>
    %65 = vector.extract_strided_slice %47 {offsets = [0, 32], sizes = [2, 16], strides = [1, 1]} : vector<2x48xf32> to vector<2x16xf32>
    %66 = vector.extract_strided_slice %48 {offsets = [0, 32], sizes = [2, 16], strides = [1, 1]} : vector<2x48xf32> to vector<2x16xf32>
    %67 = arith.addf %66, %10 : vector<2x16xf32>
    %68 = arith.mulf %56, %67 : vector<2x16xf32>
    %69 = arith.addf %65, %68 : vector<2x16xf32>
    %70 = math.tanh %69 : vector<2x16xf32>
    %cst_23 = arith.constant 1.000000e+00 : f32
    %71 = vector.broadcast %cst_23 : f32 to vector<2x16xf32>
    %72 = arith.subf %71, %64 : vector<2x16xf32>
    %73 = arith.mulf %72, %70 : vector<2x16xf32>
    %74 = arith.mulf %64, %12 : vector<2x16xf32>
    %75 = arith.addf %73, %74 : vector<2x16xf32>
    %76 = arith.index_cast %c0_i32_12 : i32 to index
    %c0_24 = arith.constant 0 : index
    %c0_25 = arith.constant 0 : index
    %77 = vector.load %arg10[%76, %c0_24, %c0_25] : memref<8x2x16xf32, #tpu.memory_space<vmem>>, vector<1x2x16xf32>
    %78 = vector.shape_cast %77 : vector<1x2x16xf32> to vector<2x16xf32>
    %79 = vector.shape_cast %43 : vector<2x16xf32> to vector<1x2x16xf32>
    tpu.vector_store %arg10[%76, %c0_24, %c0_25], %79 {strides = array<i32>} : memref<8x2x16xf32, #tpu.memory_space<vmem>>, vector<1x2x16xf32>,
    %c7_i32_26 = arith.constant 7 : i32
    %80 = arith.subi %c7_i32_26, %c0_i32_12 : i32
    %81 = arith.index_cast %80 : i32 to index
    %c0_27 = arith.constant 0 : index
    %c0_28 = arith.constant 0 : index
    %82 = vector.load %arg11[%81, %c0_27, %c0_28] : memref<8x2x16xf32, #tpu.memory_space<vmem>>, vector<1x2x16xf32>
    %83 = vector.shape_cast %82 : vector<1x2x16xf32> to vector<2x16xf32>
    %84 = vector.shape_cast %75 : vector<2x16xf32> to vector<1x2x16xf32>
    tpu.vector_store %arg11[%81, %c0_27, %c0_28], %84 {strides = array<i32>} : memref<8x2x16xf32, #tpu.memory_space<vmem>>, vector<1x2x16xf32>,
    %c1_i32 = arith.constant 1 : i32
    %85 = arith.index_cast %c1_i32 : i32 to index
    %c0_29 = arith.constant 0 : index
    %c0_30 = arith.constant 0 : index
    %86 = vector.load %arg1[%85, %c0_29, %c0_30] : memref<8x2x48xf32, #tpu.memory_space<vmem>>, vector<1x2x48xf32>
    %87 = vector.shape_cast %86 : vector<1x2x48xf32> to vector<2x48xf32>
    %cst_31 = arith.constant dense<0.000000e+00> : vector<2x48xf32>
    %88 = tpu.matmul %43, %3, %cst_31 {dimension_numbers = #tpu.dot_dimension_numbers<[1], [0], [0], [1], [0, 0, 1, 1], [], []>} : vector<2x16xf32>, vector<16x48xf32>, vector<2x48xf32> -> vector<2x48xf32>
    %89 = vector.extract_strided_slice %87 {offsets = [0, 0], sizes = [2, 16], strides = [1, 1]} : vector<2x48xf32> to vector<2x16xf32>
    %90 = vector.extract_strided_slice %88 {offsets = [0, 0], sizes = [2, 16], strides = [1, 1]} : vector<2x48xf32> to vector<2x16xf32>
    %91 = arith.addf %89, %90 : vector<2x16xf32>
    %92 = arith.negf %91 : vector<2x16xf32>
    %93 = math.exp %92 : vector<2x16xf32>
    %cst_32 = arith.constant 1.000000e+00 : f32
    %94 = vector.broadcast %cst_32 : f32 to vector<2x16xf32>
    %95 = arith.addf %94, %93 : vector<2x16xf32>
    %96 = arith.divf %94, %95 : vector<2x16xf32>
    %97 = vector.extract_strided_slice %87 {offsets = [0, 16], sizes = [2, 16], strides = [1, 1]} : vector<2x48xf32> to vector<2x16xf32>
    %98 = vector.extract_strided_slice %88 {offsets = [0, 16], sizes = [2, 16], strides = [1, 1]} : vector<2x48xf32> to vector<2x16xf32>
    %99 = arith.addf %97, %98 : vector<2x16xf32>
    %100 = arith.negf %99 : vector<2x16xf32>
    %101 = math.exp %100 : vector<2x16xf32>
    %cst_33 = arith.constant 1.000000e+00 : f32
    %102 = vector.broadcast %cst_33 : f32 to vector<2x16xf32>
    %103 = arith.addf %102, %101 : vector<2x16xf32>
    %104 = arith.divf %102, %103 : vector<2x16xf32>
    %105 = vector.extract_strided_slice %87 {offsets = [0, 32], sizes = [2, 16], strides = [1, 1]} : vector<2x48xf32> to vector<2x16xf32>
    %106 = vector.extract_strided_slice %88 {offsets = [0, 32], sizes = [2, 16], strides = [1, 1]} : vector<2x48xf32> to vector<2x16xf32>
    %107 = arith.addf %106, %7 : vector<2x16xf32>
    %108 = arith.mulf %96, %107 : vector<2x16xf32>
    %109 = arith.addf %105, %108 : vector<2x16xf32>
    %110 = math.tanh %109 : vector<2x16xf32>
    %cst_34 = arith.constant 1.000000e+00 : f32
    %111 = vector.broadcast %cst_34 : f32 to vector<2x16xf32>
    %112 = arith.subf %111, %104 : vector<2x16xf32>
    %113 = arith.mulf %112, %110 : vector<2x16xf32>
    %114 = arith.mulf %104, %43 : vector<2x16xf32>
    %115 = arith.addf %113, %114 : vector<2x16xf32>
    %c7_i32_35 = arith.constant 7 : i32
    %116 = arith.subi %c7_i32_35, %c1_i32 : i32
    %117 = arith.index_cast %116 : i32 to index
    %c0_36 = arith.constant 0 : index
    %c0_37 = arith.constant 0 : index
    %118 = vector.load %arg2[%117, %c0_36, %c0_37] : memref<8x2x48xf32, #tpu.memory_space<vmem>>, vector<1x2x48xf32>
    %119 = vector.shape_cast %118 : vector<1x2x48xf32> to vector<2x48xf32>
    %cst_38 = arith.constant dense<0.000000e+00> : vector<2x48xf32>
    %120 = tpu.matmul %75, %4, %cst_38 {dimension_numbers = #tpu.dot_dimension_numbers<[1], [0], [0], [1], [0, 0, 1, 1], [], []>} : vector<2x16xf32>, vector<16x48xf32>, vector<2x48xf32> -> vector<2x48xf32>
    %121 = vector.extract_strided_slice %119 {offsets = [0, 0], sizes = [2, 16], strides = [1, 1]} : vector<2x48xf32> to vector<2x16xf32>
    %122 = vector.extract_strided_slice %120 {offsets = [0, 0], sizes = [2, 16], strides = [1, 1]} : vector<2x48xf32> to vector<2x16xf32>
    %123 = arith.addf %121, %122 : vector<2x16xf32>
    %124 = arith.negf %123 : vector<2x16xf32>
    %125 = math.exp %124 : vector<2x16xf32>
    %cst_39 = arith.constant 1.000000e+00 : f32
    %126 = vector.broadcast %cst_39 : f32 to vector<2x16xf32>
    %127 = arith.addf %126, %125 : vector<2x16xf32>
    %128 = arith.divf %126, %127 : vector<2x16xf32>
    %129 = vector.extract_strided_slice %119 {offsets = [0, 16], sizes = [2, 16], strides = [1, 1]} : vector<2x48xf32> to vector<2x16xf32>
    %130 = vector.extract_strided_slice %120 {offsets = [0, 16], sizes = [2, 16], strides = [1, 1]} : vector<2x48xf32> to vector<2x16xf32>
    %131 = arith.addf %129, %130 : vector<2x16xf32>
    %132 = arith.negf %131 : vector<2x16xf32>
    %133 = math.exp %132 : vector<2x16xf32>
    %cst_40 = arith.constant 1.000000e+00 : f32
    %134 = vector.broadcast %cst_40 : f32 to vector<2x16xf32>
    %135 = arith.addf %134, %133 : vector<2x16xf32>
    %136 = arith.divf %134, %135 : vector<2x16xf32>
    %137 = vector.extract_strided_slice %119 {offsets = [0, 32], sizes = [2, 16], strides = [1, 1]} : vector<2x48xf32> to vector<2x16xf32>
    %138 = vector.extract_strided_slice %120 {offsets = [0, 32], sizes = [2, 16], strides = [1, 1]} : vector<2x48xf32> to vector<2x16xf32>
    %139 = arith.addf %138, %10 : vector<2x16xf32>
    %140 = arith.mulf %128, %139 : vector<2x16xf32>
    %141 = arith.addf %137, %140 : vector<2x16xf32>
    %142 = math.tanh %141 : vector<2x16xf32>
    %cst_41 = arith.constant 1.000000e+00 : f32
    %143 = vector.broadcast %cst_41 : f32 to vector<2x16xf32>
    %144 = arith.subf %143, %136 : vector<2x16xf32>
    %145 = arith.mulf %144, %142 : vector<2x16xf32>
    %146 = arith.mulf %136, %75 : vector<2x16xf32>
    %147 = arith.addf %145, %146 : vector<2x16xf32>
    %148 = arith.index_cast %c1_i32 : i32 to index
    %c0_42 = arith.constant 0 : index
    %c0_43 = arith.constant 0 : index
    %149 = vector.load %arg10[%148, %c0_42, %c0_43] : memref<8x2x16xf32, #tpu.memory_space<vmem>>, vector<1x2x16xf32>
    %150 = vector.shape_cast %149 : vector<1x2x16xf32> to vector<2x16xf32>
    %151 = vector.shape_cast %115 : vector<2x16xf32> to vector<1x2x16xf32>
    tpu.vector_store %arg10[%148, %c0_42, %c0_43], %151 {strides = array<i32>} : memref<8x2x16xf32, #tpu.memory_space<vmem>>, vector<1x2x16xf32>,
    %c7_i32_44 = arith.constant 7 : i32
    %152 = arith.subi %c7_i32_44, %c1_i32 : i32
    %153 = arith.index_cast %152 : i32 to index
    %c0_45 = arith.constant 0 : index
    %c0_46 = arith.constant 0 : index
    %154 = vector.load %arg11[%153, %c0_45, %c0_46] : memref<8x2x16xf32, #tpu.memory_space<vmem>>, vector<1x2x16xf32>
    %155 = vector.shape_cast %154 : vector<1x2x16xf32> to vector<2x16xf32>
    %156 = vector.shape_cast %147 : vector<2x16xf32> to vector<1x2x16xf32>
    tpu.vector_store %arg11[%153, %c0_45, %c0_46], %156 {strides = array<i32>} : memref<8x2x16xf32, #tpu.memory_space<vmem>>, vector<1x2x16xf32>,
    %c2_i32 = arith.constant 2 : i32
    %157 = arith.index_cast %c2_i32 : i32 to index
    %c0_47 = arith.constant 0 : index
    %c0_48 = arith.constant 0 : index
    %158 = vector.load %arg1[%157, %c0_47, %c0_48] : memref<8x2x48xf32, #tpu.memory_space<vmem>>, vector<1x2x48xf32>
    %159 = vector.shape_cast %158 : vector<1x2x48xf32> to vector<2x48xf32>
    %cst_49 = arith.constant dense<0.000000e+00> : vector<2x48xf32>
    %160 = tpu.matmul %115, %3, %cst_49 {dimension_numbers = #tpu.dot_dimension_numbers<[1], [0], [0], [1], [0, 0, 1, 1], [], []>} : vector<2x16xf32>, vector<16x48xf32>, vector<2x48xf32> -> vector<2x48xf32>
    %161 = vector.extract_strided_slice %159 {offsets = [0, 0], sizes = [2, 16], strides = [1, 1]} : vector<2x48xf32> to vector<2x16xf32>
    %162 = vector.extract_strided_slice %160 {offsets = [0, 0], sizes = [2, 16], strides = [1, 1]} : vector<2x48xf32> to vector<2x16xf32>
    %163 = arith.addf %161, %162 : vector<2x16xf32>
    %164 = arith.negf %163 : vector<2x16xf32>
    %165 = math.exp %164 : vector<2x16xf32>
    %cst_50 = arith.constant 1.000000e+00 : f32
    %166 = vector.broadcast %cst_50 : f32 to vector<2x16xf32>
    %167 = arith.addf %166, %165 : vector<2x16xf32>
    %168 = arith.divf %166, %167 : vector<2x16xf32>
    %169 = vector.extract_strided_slice %159 {offsets = [0, 16], sizes = [2, 16], strides = [1, 1]} : vector<2x48xf32> to vector<2x16xf32>
    %170 = vector.extract_strided_slice %160 {offsets = [0, 16], sizes = [2, 16], strides = [1, 1]} : vector<2x48xf32> to vector<2x16xf32>
    %171 = arith.addf %169, %170 : vector<2x16xf32>
    %172 = arith.negf %171 : vector<2x16xf32>
    %173 = math.exp %172 : vector<2x16xf32>
    %cst_51 = arith.constant 1.000000e+00 : f32
    %174 = vector.broadcast %cst_51 : f32 to vector<2x16xf32>
    %175 = arith.addf %174, %173 : vector<2x16xf32>
    %176 = arith.divf %174, %175 : vector<2x16xf32>
    %177 = vector.extract_strided_slice %159 {offsets = [0, 32], sizes = [2, 16], strides = [1, 1]} : vector<2x48xf32> to vector<2x16xf32>
    %178 = vector.extract_strided_slice %160 {offsets = [0, 32], sizes = [2, 16], strides = [1, 1]} : vector<2x48xf32> to vector<2x16xf32>
    %179 = arith.addf %178, %7 : vector<2x16xf32>
    %180 = arith.mulf %168, %179 : vector<2x16xf32>
    %181 = arith.addf %177, %180 : vector<2x16xf32>
    %182 = math.tanh %181 : vector<2x16xf32>
    %cst_52 = arith.constant 1.000000e+00 : f32
    %183 = vector.broadcast %cst_52 : f32 to vector<2x16xf32>
    %184 = arith.subf %183, %176 : vector<2x16xf32>
    %185 = arith.mulf %184, %182 : vector<2x16xf32>
    %186 = arith.mulf %176, %115 : vector<2x16xf32>
    %187 = arith.addf %185, %186 : vector<2x16xf32>
    %c7_i32_53 = arith.constant 7 : i32
    %188 = arith.subi %c7_i32_53, %c2_i32 : i32
    %189 = arith.index_cast %188 : i32 to index
    %c0_54 = arith.constant 0 : index
    %c0_55 = arith.constant 0 : index
    %190 = vector.load %arg2[%189, %c0_54, %c0_55] : memref<8x2x48xf32, #tpu.memory_space<vmem>>, vector<1x2x48xf32>
    %191 = vector.shape_cast %190 : vector<1x2x48xf32> to vector<2x48xf32>
    %cst_56 = arith.constant dense<0.000000e+00> : vector<2x48xf32>
    %192 = tpu.matmul %147, %4, %cst_56 {dimension_numbers = #tpu.dot_dimension_numbers<[1], [0], [0], [1], [0, 0, 1, 1], [], []>} : vector<2x16xf32>, vector<16x48xf32>, vector<2x48xf32> -> vector<2x48xf32>
    %193 = vector.extract_strided_slice %191 {offsets = [0, 0], sizes = [2, 16], strides = [1, 1]} : vector<2x48xf32> to vector<2x16xf32>
    %194 = vector.extract_strided_slice %192 {offsets = [0, 0], sizes = [2, 16], strides = [1, 1]} : vector<2x48xf32> to vector<2x16xf32>
    %195 = arith.addf %193, %194 : vector<2x16xf32>
    %196 = arith.negf %195 : vector<2x16xf32>
    %197 = math.exp %196 : vector<2x16xf32>
    %cst_57 = arith.constant 1.000000e+00 : f32
    %198 = vector.broadcast %cst_57 : f32 to vector<2x16xf32>
    %199 = arith.addf %198, %197 : vector<2x16xf32>
    %200 = arith.divf %198, %199 : vector<2x16xf32>
    %201 = vector.extract_strided_slice %191 {offsets = [0, 16], sizes = [2, 16], strides = [1, 1]} : vector<2x48xf32> to vector<2x16xf32>
    %202 = vector.extract_strided_slice %192 {offsets = [0, 16], sizes = [2, 16], strides = [1, 1]} : vector<2x48xf32> to vector<2x16xf32>
    %203 = arith.addf %201, %202 : vector<2x16xf32>
    %204 = arith.negf %203 : vector<2x16xf32>
    %205 = math.exp %204 : vector<2x16xf32>
    %cst_58 = arith.constant 1.000000e+00 : f32
    %206 = vector.broadcast %cst_58 : f32 to vector<2x16xf32>
    %207 = arith.addf %206, %205 : vector<2x16xf32>
    %208 = arith.divf %206, %207 : vector<2x16xf32>
    %209 = vector.extract_strided_slice %191 {offsets = [0, 32], sizes = [2, 16], strides = [1, 1]} : vector<2x48xf32> to vector<2x16xf32>
    %210 = vector.extract_strided_slice %192 {offsets = [0, 32], sizes = [2, 16], strides = [1, 1]} : vector<2x48xf32> to vector<2x16xf32>
    %211 = arith.addf %210, %10 : vector<2x16xf32>
    %212 = arith.mulf %200, %211 : vector<2x16xf32>
    %213 = arith.addf %209, %212 : vector<2x16xf32>
    %214 = math.tanh %213 : vector<2x16xf32>
    %cst_59 = arith.constant 1.000000e+00 : f32
    %215 = vector.broadcast %cst_59 : f32 to vector<2x16xf32>
    %216 = arith.subf %215, %208 : vector<2x16xf32>
    %217 = arith.mulf %216, %214 : vector<2x16xf32>
    %218 = arith.mulf %208, %147 : vector<2x16xf32>
    %219 = arith.addf %217, %218 : vector<2x16xf32>
    %220 = arith.index_cast %c2_i32 : i32 to index
    %c0_60 = arith.constant 0 : index
    %c0_61 = arith.constant 0 : index
    %221 = vector.load %arg10[%220, %c0_60, %c0_61] : memref<8x2x16xf32, #tpu.memory_space<vmem>>, vector<1x2x16xf32>
    %222 = vector.shape_cast %221 : vector<1x2x16xf32> to vector<2x16xf32>
    %223 = vector.shape_cast %187 : vector<2x16xf32> to vector<1x2x16xf32>
    tpu.vector_store %arg10[%220, %c0_60, %c0_61], %223 {strides = array<i32>} : memref<8x2x16xf32, #tpu.memory_space<vmem>>, vector<1x2x16xf32>,
    %c7_i32_62 = arith.constant 7 : i32
    %224 = arith.subi %c7_i32_62, %c2_i32 : i32
    %225 = arith.index_cast %224 : i32 to index
    %c0_63 = arith.constant 0 : index
    %c0_64 = arith.constant 0 : index
    %226 = vector.load %arg11[%225, %c0_63, %c0_64] : memref<8x2x16xf32, #tpu.memory_space<vmem>>, vector<1x2x16xf32>
    %227 = vector.shape_cast %226 : vector<1x2x16xf32> to vector<2x16xf32>
    %228 = vector.shape_cast %219 : vector<2x16xf32> to vector<1x2x16xf32>
    tpu.vector_store %arg11[%225, %c0_63, %c0_64], %228 {strides = array<i32>} : memref<8x2x16xf32, #tpu.memory_space<vmem>>, vector<1x2x16xf32>,
    %c3_i32 = arith.constant 3 : i32
    %229 = arith.index_cast %c3_i32 : i32 to index
    %c0_65 = arith.constant 0 : index
    %c0_66 = arith.constant 0 : index
    %230 = vector.load %arg1[%229, %c0_65, %c0_66] : memref<8x2x48xf32, #tpu.memory_space<vmem>>, vector<1x2x48xf32>
    %231 = vector.shape_cast %230 : vector<1x2x48xf32> to vector<2x48xf32>
    %cst_67 = arith.constant dense<0.000000e+00> : vector<2x48xf32>
    %232 = tpu.matmul %187, %3, %cst_67 {dimension_numbers = #tpu.dot_dimension_numbers<[1], [0], [0], [1], [0, 0, 1, 1], [], []>} : vector<2x16xf32>, vector<16x48xf32>, vector<2x48xf32> -> vector<2x48xf32>
    %233 = vector.extract_strided_slice %231 {offsets = [0, 0], sizes = [2, 16], strides = [1, 1]} : vector<2x48xf32> to vector<2x16xf32>
    %234 = vector.extract_strided_slice %232 {offsets = [0, 0], sizes = [2, 16], strides = [1, 1]} : vector<2x48xf32> to vector<2x16xf32>
    %235 = arith.addf %233, %234 : vector<2x16xf32>
    %236 = arith.negf %235 : vector<2x16xf32>
    %237 = math.exp %236 : vector<2x16xf32>
    %cst_68 = arith.constant 1.000000e+00 : f32
    %238 = vector.broadcast %cst_68 : f32 to vector<2x16xf32>
    %239 = arith.addf %238, %237 : vector<2x16xf32>
    %240 = arith.divf %238, %239 : vector<2x16xf32>
    %241 = vector.extract_strided_slice %231 {offsets = [0, 16], sizes = [2, 16], strides = [1, 1]} : vector<2x48xf32> to vector<2x16xf32>
    %242 = vector.extract_strided_slice %232 {offsets = [0, 16], sizes = [2, 16], strides = [1, 1]} : vector<2x48xf32> to vector<2x16xf32>
    %243 = arith.addf %241, %242 : vector<2x16xf32>
    %244 = arith.negf %243 : vector<2x16xf32>
    %245 = math.exp %244 : vector<2x16xf32>
    %cst_69 = arith.constant 1.000000e+00 : f32
    %246 = vector.broadcast %cst_69 : f32 to vector<2x16xf32>
    %247 = arith.addf %246, %245 : vector<2x16xf32>
    %248 = arith.divf %246, %247 : vector<2x16xf32>
    %249 = vector.extract_strided_slice %231 {offsets = [0, 32], sizes = [2, 16], strides = [1, 1]} : vector<2x48xf32> to vector<2x16xf32>
    %250 = vector.extract_strided_slice %232 {offsets = [0, 32], sizes = [2, 16], strides = [1, 1]} : vector<2x48xf32> to vector<2x16xf32>
    %251 = arith.addf %250, %7 : vector<2x16xf32>
    %252 = arith.mulf %240, %251 : vector<2x16xf32>
    %253 = arith.addf %249, %252 : vector<2x16xf32>
    %254 = math.tanh %253 : vector<2x16xf32>
    %cst_70 = arith.constant 1.000000e+00 : f32
    %255 = vector.broadcast %cst_70 : f32 to vector<2x16xf32>
    %256 = arith.subf %255, %248 : vector<2x16xf32>
    %257 = arith.mulf %256, %254 : vector<2x16xf32>
    %258 = arith.mulf %248, %187 : vector<2x16xf32>
    %259 = arith.addf %257, %258 : vector<2x16xf32>
    %c7_i32_71 = arith.constant 7 : i32
    %260 = arith.subi %c7_i32_71, %c3_i32 : i32
    %261 = arith.index_cast %260 : i32 to index
    %c0_72 = arith.constant 0 : index
    %c0_73 = arith.constant 0 : index
    %262 = vector.load %arg2[%261, %c0_72, %c0_73] : memref<8x2x48xf32, #tpu.memory_space<vmem>>, vector<1x2x48xf32>
    %263 = vector.shape_cast %262 : vector<1x2x48xf32> to vector<2x48xf32>
    %cst_74 = arith.constant dense<0.000000e+00> : vector<2x48xf32>
    %264 = tpu.matmul %219, %4, %cst_74 {dimension_numbers = #tpu.dot_dimension_numbers<[1], [0], [0], [1], [0, 0, 1, 1], [], []>} : vector<2x16xf32>, vector<16x48xf32>, vector<2x48xf32> -> vector<2x48xf32>
    %265 = vector.extract_strided_slice %263 {offsets = [0, 0], sizes = [2, 16], strides = [1, 1]} : vector<2x48xf32> to vector<2x16xf32>
    %266 = vector.extract_strided_slice %264 {offsets = [0, 0], sizes = [2, 16], strides = [1, 1]} : vector<2x48xf32> to vector<2x16xf32>
    %267 = arith.addf %265, %266 : vector<2x16xf32>
    %268 = arith.negf %267 : vector<2x16xf32>
    %269 = math.exp %268 : vector<2x16xf32>
    %cst_75 = arith.constant 1.000000e+00 : f32
    %270 = vector.broadcast %cst_75 : f32 to vector<2x16xf32>
    %271 = arith.addf %270, %269 : vector<2x16xf32>
    %272 = arith.divf %270, %271 : vector<2x16xf32>
    %273 = vector.extract_strided_slice %263 {offsets = [0, 16], sizes = [2, 16], strides = [1, 1]} : vector<2x48xf32> to vector<2x16xf32>
    %274 = vector.extract_strided_slice %264 {offsets = [0, 16], sizes = [2, 16], strides = [1, 1]} : vector<2x48xf32> to vector<2x16xf32>
    %275 = arith.addf %273, %274 : vector<2x16xf32>
    %276 = arith.negf %275 : vector<2x16xf32>
    %277 = math.exp %276 : vector<2x16xf32>
    %cst_76 = arith.constant 1.000000e+00 : f32
    %278 = vector.broadcast %cst_76 : f32 to vector<2x16xf32>
    %279 = arith.addf %278, %277 : vector<2x16xf32>
    %280 = arith.divf %278, %279 : vector<2x16xf32>
    %281 = vector.extract_strided_slice %263 {offsets = [0, 32], sizes = [2, 16], strides = [1, 1]} : vector<2x48xf32> to vector<2x16xf32>
    %282 = vector.extract_strided_slice %264 {offsets = [0, 32], sizes = [2, 16], strides = [1, 1]} : vector<2x48xf32> to vector<2x16xf32>
    %283 = arith.addf %282, %10 : vector<2x16xf32>
    %284 = arith.mulf %272, %283 : vector<2x16xf32>
    %285 = arith.addf %281, %284 : vector<2x16xf32>
    %286 = math.tanh %285 : vector<2x16xf32>
    %cst_77 = arith.constant 1.000000e+00 : f32
    %287 = vector.broadcast %cst_77 : f32 to vector<2x16xf32>
    %288 = arith.subf %287, %280 : vector<2x16xf32>
    %289 = arith.mulf %288, %286 : vector<2x16xf32>
    %290 = arith.mulf %280, %219 : vector<2x16xf32>
    %291 = arith.addf %289, %290 : vector<2x16xf32>
    %292 = arith.index_cast %c3_i32 : i32 to index
    %c0_78 = arith.constant 0 : index
    %c0_79 = arith.constant 0 : index
    %293 = vector.load %arg10[%292, %c0_78, %c0_79] : memref<8x2x16xf32, #tpu.memory_space<vmem>>, vector<1x2x16xf32>
    %294 = vector.shape_cast %293 : vector<1x2x16xf32> to vector<2x16xf32>
    %295 = vector.shape_cast %259 : vector<2x16xf32> to vector<1x2x16xf32>
    tpu.vector_store %arg10[%292, %c0_78, %c0_79], %295 {strides = array<i32>} : memref<8x2x16xf32, #tpu.memory_space<vmem>>, vector<1x2x16xf32>,
    %c7_i32_80 = arith.constant 7 : i32
    %296 = arith.subi %c7_i32_80, %c3_i32 : i32
    %297 = arith.index_cast %296 : i32 to index
    %c0_81 = arith.constant 0 : index
    %c0_82 = arith.constant 0 : index
    %298 = vector.load %arg11[%297, %c0_81, %c0_82] : memref<8x2x16xf32, #tpu.memory_space<vmem>>, vector<1x2x16xf32>
    %299 = vector.shape_cast %298 : vector<1x2x16xf32> to vector<2x16xf32>
    %300 = vector.shape_cast %291 : vector<2x16xf32> to vector<1x2x16xf32>
    tpu.vector_store %arg11[%297, %c0_81, %c0_82], %300 {strides = array<i32>} : memref<8x2x16xf32, #tpu.memory_space<vmem>>, vector<1x2x16xf32>,
    %c4_i32 = arith.constant 4 : i32
    %301 = arith.index_cast %c4_i32 : i32 to index
    %c0_83 = arith.constant 0 : index
    %c0_84 = arith.constant 0 : index
    %302 = vector.load %arg1[%301, %c0_83, %c0_84] : memref<8x2x48xf32, #tpu.memory_space<vmem>>, vector<1x2x48xf32>
    %303 = vector.shape_cast %302 : vector<1x2x48xf32> to vector<2x48xf32>
    %cst_85 = arith.constant dense<0.000000e+00> : vector<2x48xf32>
    %304 = tpu.matmul %259, %3, %cst_85 {dimension_numbers = #tpu.dot_dimension_numbers<[1], [0], [0], [1], [0, 0, 1, 1], [], []>} : vector<2x16xf32>, vector<16x48xf32>, vector<2x48xf32> -> vector<2x48xf32>
    %305 = vector.extract_strided_slice %303 {offsets = [0, 0], sizes = [2, 16], strides = [1, 1]} : vector<2x48xf32> to vector<2x16xf32>
    %306 = vector.extract_strided_slice %304 {offsets = [0, 0], sizes = [2, 16], strides = [1, 1]} : vector<2x48xf32> to vector<2x16xf32>
    %307 = arith.addf %305, %306 : vector<2x16xf32>
    %308 = arith.negf %307 : vector<2x16xf32>
    %309 = math.exp %308 : vector<2x16xf32>
    %cst_86 = arith.constant 1.000000e+00 : f32
    %310 = vector.broadcast %cst_86 : f32 to vector<2x16xf32>
    %311 = arith.addf %310, %309 : vector<2x16xf32>
    %312 = arith.divf %310, %311 : vector<2x16xf32>
    %313 = vector.extract_strided_slice %303 {offsets = [0, 16], sizes = [2, 16], strides = [1, 1]} : vector<2x48xf32> to vector<2x16xf32>
    %314 = vector.extract_strided_slice %304 {offsets = [0, 16], sizes = [2, 16], strides = [1, 1]} : vector<2x48xf32> to vector<2x16xf32>
    %315 = arith.addf %313, %314 : vector<2x16xf32>
    %316 = arith.negf %315 : vector<2x16xf32>
    %317 = math.exp %316 : vector<2x16xf32>
    %cst_87 = arith.constant 1.000000e+00 : f32
    %318 = vector.broadcast %cst_87 : f32 to vector<2x16xf32>
    %319 = arith.addf %318, %317 : vector<2x16xf32>
    %320 = arith.divf %318, %319 : vector<2x16xf32>
    %321 = vector.extract_strided_slice %303 {offsets = [0, 32], sizes = [2, 16], strides = [1, 1]} : vector<2x48xf32> to vector<2x16xf32>
    %322 = vector.extract_strided_slice %304 {offsets = [0, 32], sizes = [2, 16], strides = [1, 1]} : vector<2x48xf32> to vector<2x16xf32>
    %323 = arith.addf %322, %7 : vector<2x16xf32>
    %324 = arith.mulf %312, %323 : vector<2x16xf32>
    %325 = arith.addf %321, %324 : vector<2x16xf32>
    %326 = math.tanh %325 : vector<2x16xf32>
    %cst_88 = arith.constant 1.000000e+00 : f32
    %327 = vector.broadcast %cst_88 : f32 to vector<2x16xf32>
    %328 = arith.subf %327, %320 : vector<2x16xf32>
    %329 = arith.mulf %328, %326 : vector<2x16xf32>
    %330 = arith.mulf %320, %259 : vector<2x16xf32>
    %331 = arith.addf %329, %330 : vector<2x16xf32>
    %c7_i32_89 = arith.constant 7 : i32
    %332 = arith.subi %c7_i32_89, %c4_i32 : i32
    %333 = arith.index_cast %332 : i32 to index
    %c0_90 = arith.constant 0 : index
    %c0_91 = arith.constant 0 : index
    %334 = vector.load %arg2[%333, %c0_90, %c0_91] : memref<8x2x48xf32, #tpu.memory_space<vmem>>, vector<1x2x48xf32>
    %335 = vector.shape_cast %334 : vector<1x2x48xf32> to vector<2x48xf32>
    %cst_92 = arith.constant dense<0.000000e+00> : vector<2x48xf32>
    %336 = tpu.matmul %291, %4, %cst_92 {dimension_numbers = #tpu.dot_dimension_numbers<[1], [0], [0], [1], [0, 0, 1, 1], [], []>} : vector<2x16xf32>, vector<16x48xf32>, vector<2x48xf32> -> vector<2x48xf32>
    %337 = vector.extract_strided_slice %335 {offsets = [0, 0], sizes = [2, 16], strides = [1, 1]} : vector<2x48xf32> to vector<2x16xf32>
    %338 = vector.extract_strided_slice %336 {offsets = [0, 0], sizes = [2, 16], strides = [1, 1]} : vector<2x48xf32> to vector<2x16xf32>
    %339 = arith.addf %337, %338 : vector<2x16xf32>
    %340 = arith.negf %339 : vector<2x16xf32>
    %341 = math.exp %340 : vector<2x16xf32>
    %cst_93 = arith.constant 1.000000e+00 : f32
    %342 = vector.broadcast %cst_93 : f32 to vector<2x16xf32>
    %343 = arith.addf %342, %341 : vector<2x16xf32>
    %344 = arith.divf %342, %343 : vector<2x16xf32>
    %345 = vector.extract_strided_slice %335 {offsets = [0, 16], sizes = [2, 16], strides = [1, 1]} : vector<2x48xf32> to vector<2x16xf32>
    %346 = vector.extract_strided_slice %336 {offsets = [0, 16], sizes = [2, 16], strides = [1, 1]} : vector<2x48xf32> to vector<2x16xf32>
    %347 = arith.addf %345, %346 : vector<2x16xf32>
    %348 = arith.negf %347 : vector<2x16xf32>
    %349 = math.exp %348 : vector<2x16xf32>
    %cst_94 = arith.constant 1.000000e+00 : f32
    %350 = vector.broadcast %cst_94 : f32 to vector<2x16xf32>
    %351 = arith.addf %350, %349 : vector<2x16xf32>
    %352 = arith.divf %350, %351 : vector<2x16xf32>
    %353 = vector.extract_strided_slice %335 {offsets = [0, 32], sizes = [2, 16], strides = [1, 1]} : vector<2x48xf32> to vector<2x16xf32>
    %354 = vector.extract_strided_slice %336 {offsets = [0, 32], sizes = [2, 16], strides = [1, 1]} : vector<2x48xf32> to vector<2x16xf32>
    %355 = arith.addf %354, %10 : vector<2x16xf32>
    %356 = arith.mulf %344, %355 : vector<2x16xf32>
    %357 = arith.addf %353, %356 : vector<2x16xf32>
    %358 = math.tanh %357 : vector<2x16xf32>
    %cst_95 = arith.constant 1.000000e+00 : f32
    %359 = vector.broadcast %cst_95 : f32 to vector<2x16xf32>
    %360 = arith.subf %359, %352 : vector<2x16xf32>
    %361 = arith.mulf %360, %358 : vector<2x16xf32>
    %362 = arith.mulf %352, %291 : vector<2x16xf32>
    %363 = arith.addf %361, %362 : vector<2x16xf32>
    %364 = arith.index_cast %c4_i32 : i32 to index
    %c0_96 = arith.constant 0 : index
    %c0_97 = arith.constant 0 : index
    %365 = vector.load %arg10[%364, %c0_96, %c0_97] : memref<8x2x16xf32, #tpu.memory_space<vmem>>, vector<1x2x16xf32>
    %366 = vector.shape_cast %365 : vector<1x2x16xf32> to vector<2x16xf32>
    %367 = vector.shape_cast %331 : vector<2x16xf32> to vector<1x2x16xf32>
    tpu.vector_store %arg10[%364, %c0_96, %c0_97], %367 {strides = array<i32>} : memref<8x2x16xf32, #tpu.memory_space<vmem>>, vector<1x2x16xf32>,
    %c7_i32_98 = arith.constant 7 : i32
    %368 = arith.subi %c7_i32_98, %c4_i32 : i32
    %369 = arith.index_cast %368 : i32 to index
    %c0_99 = arith.constant 0 : index
    %c0_100 = arith.constant 0 : index
    %370 = vector.load %arg11[%369, %c0_99, %c0_100] : memref<8x2x16xf32, #tpu.memory_space<vmem>>, vector<1x2x16xf32>
    %371 = vector.shape_cast %370 : vector<1x2x16xf32> to vector<2x16xf32>
    %372 = vector.shape_cast %363 : vector<2x16xf32> to vector<1x2x16xf32>
    tpu.vector_store %arg11[%369, %c0_99, %c0_100], %372 {strides = array<i32>} : memref<8x2x16xf32, #tpu.memory_space<vmem>>, vector<1x2x16xf32>,
    %c5_i32 = arith.constant 5 : i32
    %373 = arith.index_cast %c5_i32 : i32 to index
    %c0_101 = arith.constant 0 : index
    %c0_102 = arith.constant 0 : index
    %374 = vector.load %arg1[%373, %c0_101, %c0_102] : memref<8x2x48xf32, #tpu.memory_space<vmem>>, vector<1x2x48xf32>
    %375 = vector.shape_cast %374 : vector<1x2x48xf32> to vector<2x48xf32>
    %cst_103 = arith.constant dense<0.000000e+00> : vector<2x48xf32>
    %376 = tpu.matmul %331, %3, %cst_103 {dimension_numbers = #tpu.dot_dimension_numbers<[1], [0], [0], [1], [0, 0, 1, 1], [], []>} : vector<2x16xf32>, vector<16x48xf32>, vector<2x48xf32> -> vector<2x48xf32>
    %377 = vector.extract_strided_slice %375 {offsets = [0, 0], sizes = [2, 16], strides = [1, 1]} : vector<2x48xf32> to vector<2x16xf32>
    %378 = vector.extract_strided_slice %376 {offsets = [0, 0], sizes = [2, 16], strides = [1, 1]} : vector<2x48xf32> to vector<2x16xf32>
    %379 = arith.addf %377, %378 : vector<2x16xf32>
    %380 = arith.negf %379 : vector<2x16xf32>
    %381 = math.exp %380 : vector<2x16xf32>
    %cst_104 = arith.constant 1.000000e+00 : f32
    %382 = vector.broadcast %cst_104 : f32 to vector<2x16xf32>
    %383 = arith.addf %382, %381 : vector<2x16xf32>
    %384 = arith.divf %382, %383 : vector<2x16xf32>
    %385 = vector.extract_strided_slice %375 {offsets = [0, 16], sizes = [2, 16], strides = [1, 1]} : vector<2x48xf32> to vector<2x16xf32>
    %386 = vector.extract_strided_slice %376 {offsets = [0, 16], sizes = [2, 16], strides = [1, 1]} : vector<2x48xf32> to vector<2x16xf32>
    %387 = arith.addf %385, %386 : vector<2x16xf32>
    %388 = arith.negf %387 : vector<2x16xf32>
    %389 = math.exp %388 : vector<2x16xf32>
    %cst_105 = arith.constant 1.000000e+00 : f32
    %390 = vector.broadcast %cst_105 : f32 to vector<2x16xf32>
    %391 = arith.addf %390, %389 : vector<2x16xf32>
    %392 = arith.divf %390, %391 : vector<2x16xf32>
    %393 = vector.extract_strided_slice %375 {offsets = [0, 32], sizes = [2, 16], strides = [1, 1]} : vector<2x48xf32> to vector<2x16xf32>
    %394 = vector.extract_strided_slice %376 {offsets = [0, 32], sizes = [2, 16], strides = [1, 1]} : vector<2x48xf32> to vector<2x16xf32>
    %395 = arith.addf %394, %7 : vector<2x16xf32>
    %396 = arith.mulf %384, %395 : vector<2x16xf32>
    %397 = arith.addf %393, %396 : vector<2x16xf32>
    %398 = math.tanh %397 : vector<2x16xf32>
    %cst_106 = arith.constant 1.000000e+00 : f32
    %399 = vector.broadcast %cst_106 : f32 to vector<2x16xf32>
    %400 = arith.subf %399, %392 : vector<2x16xf32>
    %401 = arith.mulf %400, %398 : vector<2x16xf32>
    %402 = arith.mulf %392, %331 : vector<2x16xf32>
    %403 = arith.addf %401, %402 : vector<2x16xf32>
    %c7_i32_107 = arith.constant 7 : i32
    %404 = arith.subi %c7_i32_107, %c5_i32 : i32
    %405 = arith.index_cast %404 : i32 to index
    %c0_108 = arith.constant 0 : index
    %c0_109 = arith.constant 0 : index
    %406 = vector.load %arg2[%405, %c0_108, %c0_109] : memref<8x2x48xf32, #tpu.memory_space<vmem>>, vector<1x2x48xf32>
    %407 = vector.shape_cast %406 : vector<1x2x48xf32> to vector<2x48xf32>
    %cst_110 = arith.constant dense<0.000000e+00> : vector<2x48xf32>
    %408 = tpu.matmul %363, %4, %cst_110 {dimension_numbers = #tpu.dot_dimension_numbers<[1], [0], [0], [1], [0, 0, 1, 1], [], []>} : vector<2x16xf32>, vector<16x48xf32>, vector<2x48xf32> -> vector<2x48xf32>
    %409 = vector.extract_strided_slice %407 {offsets = [0, 0], sizes = [2, 16], strides = [1, 1]} : vector<2x48xf32> to vector<2x16xf32>
    %410 = vector.extract_strided_slice %408 {offsets = [0, 0], sizes = [2, 16], strides = [1, 1]} : vector<2x48xf32> to vector<2x16xf32>
    %411 = arith.addf %409, %410 : vector<2x16xf32>
    %412 = arith.negf %411 : vector<2x16xf32>
    %413 = math.exp %412 : vector<2x16xf32>
    %cst_111 = arith.constant 1.000000e+00 : f32
    %414 = vector.broadcast %cst_111 : f32 to vector<2x16xf32>
    %415 = arith.addf %414, %413 : vector<2x16xf32>
    %416 = arith.divf %414, %415 : vector<2x16xf32>
    %417 = vector.extract_strided_slice %407 {offsets = [0, 16], sizes = [2, 16], strides = [1, 1]} : vector<2x48xf32> to vector<2x16xf32>
    %418 = vector.extract_strided_slice %408 {offsets = [0, 16], sizes = [2, 16], strides = [1, 1]} : vector<2x48xf32> to vector<2x16xf32>
    %419 = arith.addf %417, %418 : vector<2x16xf32>
    %420 = arith.negf %419 : vector<2x16xf32>
    %421 = math.exp %420 : vector<2x16xf32>
    %cst_112 = arith.constant 1.000000e+00 : f32
    %422 = vector.broadcast %cst_112 : f32 to vector<2x16xf32>
    %423 = arith.addf %422, %421 : vector<2x16xf32>
    %424 = arith.divf %422, %423 : vector<2x16xf32>
    %425 = vector.extract_strided_slice %407 {offsets = [0, 32], sizes = [2, 16], strides = [1, 1]} : vector<2x48xf32> to vector<2x16xf32>
    %426 = vector.extract_strided_slice %408 {offsets = [0, 32], sizes = [2, 16], strides = [1, 1]} : vector<2x48xf32> to vector<2x16xf32>
    %427 = arith.addf %426, %10 : vector<2x16xf32>
    %428 = arith.mulf %416, %427 : vector<2x16xf32>
    %429 = arith.addf %425, %428 : vector<2x16xf32>
    %430 = math.tanh %429 : vector<2x16xf32>
    %cst_113 = arith.constant 1.000000e+00 : f32
    %431 = vector.broadcast %cst_113 : f32 to vector<2x16xf32>
    %432 = arith.subf %431, %424 : vector<2x16xf32>
    %433 = arith.mulf %432, %430 : vector<2x16xf32>
    %434 = arith.mulf %424, %363 : vector<2x16xf32>
    %435 = arith.addf %433, %434 : vector<2x16xf32>
    %436 = arith.index_cast %c5_i32 : i32 to index
    %c0_114 = arith.constant 0 : index
    %c0_115 = arith.constant 0 : index
    %437 = vector.load %arg10[%436, %c0_114, %c0_115] : memref<8x2x16xf32, #tpu.memory_space<vmem>>, vector<1x2x16xf32>
    %438 = vector.shape_cast %437 : vector<1x2x16xf32> to vector<2x16xf32>
    %439 = vector.shape_cast %403 : vector<2x16xf32> to vector<1x2x16xf32>
    tpu.vector_store %arg10[%436, %c0_114, %c0_115], %439 {strides = array<i32>} : memref<8x2x16xf32, #tpu.memory_space<vmem>>, vector<1x2x16xf32>,
    %c7_i32_116 = arith.constant 7 : i32
    %440 = arith.subi %c7_i32_116, %c5_i32 : i32
    %441 = arith.index_cast %440 : i32 to index
    %c0_117 = arith.constant 0 : index
    %c0_118 = arith.constant 0 : index
    %442 = vector.load %arg11[%441, %c0_117, %c0_118] : memref<8x2x16xf32, #tpu.memory_space<vmem>>, vector<1x2x16xf32>
    %443 = vector.shape_cast %442 : vector<1x2x16xf32> to vector<2x16xf32>
    %444 = vector.shape_cast %435 : vector<2x16xf32> to vector<1x2x16xf32>
    tpu.vector_store %arg11[%441, %c0_117, %c0_118], %444 {strides = array<i32>} : memref<8x2x16xf32, #tpu.memory_space<vmem>>, vector<1x2x16xf32>,
    %c6_i32 = arith.constant 6 : i32
    %445 = arith.index_cast %c6_i32 : i32 to index
    %c0_119 = arith.constant 0 : index
    %c0_120 = arith.constant 0 : index
    %446 = vector.load %arg1[%445, %c0_119, %c0_120] : memref<8x2x48xf32, #tpu.memory_space<vmem>>, vector<1x2x48xf32>
    %447 = vector.shape_cast %446 : vector<1x2x48xf32> to vector<2x48xf32>
    %cst_121 = arith.constant dense<0.000000e+00> : vector<2x48xf32>
    %448 = tpu.matmul %403, %3, %cst_121 {dimension_numbers = #tpu.dot_dimension_numbers<[1], [0], [0], [1], [0, 0, 1, 1], [], []>} : vector<2x16xf32>, vector<16x48xf32>, vector<2x48xf32> -> vector<2x48xf32>
    %449 = vector.extract_strided_slice %447 {offsets = [0, 0], sizes = [2, 16], strides = [1, 1]} : vector<2x48xf32> to vector<2x16xf32>
    %450 = vector.extract_strided_slice %448 {offsets = [0, 0], sizes = [2, 16], strides = [1, 1]} : vector<2x48xf32> to vector<2x16xf32>
    %451 = arith.addf %449, %450 : vector<2x16xf32>
    %452 = arith.negf %451 : vector<2x16xf32>
    %453 = math.exp %452 : vector<2x16xf32>
    %cst_122 = arith.constant 1.000000e+00 : f32
    %454 = vector.broadcast %cst_122 : f32 to vector<2x16xf32>
    %455 = arith.addf %454, %453 : vector<2x16xf32>
    %456 = arith.divf %454, %455 : vector<2x16xf32>
    %457 = vector.extract_strided_slice %447 {offsets = [0, 16], sizes = [2, 16], strides = [1, 1]} : vector<2x48xf32> to vector<2x16xf32>
    %458 = vector.extract_strided_slice %448 {offsets = [0, 16], sizes = [2, 16], strides = [1, 1]} : vector<2x48xf32> to vector<2x16xf32>
    %459 = arith.addf %457, %458 : vector<2x16xf32>
    %460 = arith.negf %459 : vector<2x16xf32>
    %461 = math.exp %460 : vector<2x16xf32>
    %cst_123 = arith.constant 1.000000e+00 : f32
    %462 = vector.broadcast %cst_123 : f32 to vector<2x16xf32>
    %463 = arith.addf %462, %461 : vector<2x16xf32>
    %464 = arith.divf %462, %463 : vector<2x16xf32>
    %465 = vector.extract_strided_slice %447 {offsets = [0, 32], sizes = [2, 16], strides = [1, 1]} : vector<2x48xf32> to vector<2x16xf32>
    %466 = vector.extract_strided_slice %448 {offsets = [0, 32], sizes = [2, 16], strides = [1, 1]} : vector<2x48xf32> to vector<2x16xf32>
    %467 = arith.addf %466, %7 : vector<2x16xf32>
    %468 = arith.mulf %456, %467 : vector<2x16xf32>
    %469 = arith.addf %465, %468 : vector<2x16xf32>
    %470 = math.tanh %469 : vector<2x16xf32>
    %cst_124 = arith.constant 1.000000e+00 : f32
    %471 = vector.broadcast %cst_124 : f32 to vector<2x16xf32>
    %472 = arith.subf %471, %464 : vector<2x16xf32>
    %473 = arith.mulf %472, %470 : vector<2x16xf32>
    %474 = arith.mulf %464, %403 : vector<2x16xf32>
    %475 = arith.addf %473, %474 : vector<2x16xf32>
    %c7_i32_125 = arith.constant 7 : i32
    %476 = arith.subi %c7_i32_125, %c6_i32 : i32
    %477 = arith.index_cast %476 : i32 to index
    %c0_126 = arith.constant 0 : index
    %c0_127 = arith.constant 0 : index
    %478 = vector.load %arg2[%477, %c0_126, %c0_127] : memref<8x2x48xf32, #tpu.memory_space<vmem>>, vector<1x2x48xf32>
    %479 = vector.shape_cast %478 : vector<1x2x48xf32> to vector<2x48xf32>
    %cst_128 = arith.constant dense<0.000000e+00> : vector<2x48xf32>
    %480 = tpu.matmul %435, %4, %cst_128 {dimension_numbers = #tpu.dot_dimension_numbers<[1], [0], [0], [1], [0, 0, 1, 1], [], []>} : vector<2x16xf32>, vector<16x48xf32>, vector<2x48xf32> -> vector<2x48xf32>
    %481 = vector.extract_strided_slice %479 {offsets = [0, 0], sizes = [2, 16], strides = [1, 1]} : vector<2x48xf32> to vector<2x16xf32>
    %482 = vector.extract_strided_slice %480 {offsets = [0, 0], sizes = [2, 16], strides = [1, 1]} : vector<2x48xf32> to vector<2x16xf32>
    %483 = arith.addf %481, %482 : vector<2x16xf32>
    %484 = arith.negf %483 : vector<2x16xf32>
    %485 = math.exp %484 : vector<2x16xf32>
    %cst_129 = arith.constant 1.000000e+00 : f32
    %486 = vector.broadcast %cst_129 : f32 to vector<2x16xf32>
    %487 = arith.addf %486, %485 : vector<2x16xf32>
    %488 = arith.divf %486, %487 : vector<2x16xf32>
    %489 = vector.extract_strided_slice %479 {offsets = [0, 16], sizes = [2, 16], strides = [1, 1]} : vector<2x48xf32> to vector<2x16xf32>
    %490 = vector.extract_strided_slice %480 {offsets = [0, 16], sizes = [2, 16], strides = [1, 1]} : vector<2x48xf32> to vector<2x16xf32>
    %491 = arith.addf %489, %490 : vector<2x16xf32>
    %492 = arith.negf %491 : vector<2x16xf32>
    %493 = math.exp %492 : vector<2x16xf32>
    %cst_130 = arith.constant 1.000000e+00 : f32
    %494 = vector.broadcast %cst_130 : f32 to vector<2x16xf32>
    %495 = arith.addf %494, %493 : vector<2x16xf32>
    %496 = arith.divf %494, %495 : vector<2x16xf32>
    %497 = vector.extract_strided_slice %479 {offsets = [0, 32], sizes = [2, 16], strides = [1, 1]} : vector<2x48xf32> to vector<2x16xf32>
    %498 = vector.extract_strided_slice %480 {offsets = [0, 32], sizes = [2, 16], strides = [1, 1]} : vector<2x48xf32> to vector<2x16xf32>
    %499 = arith.addf %498, %10 : vector<2x16xf32>
    %500 = arith.mulf %488, %499 : vector<2x16xf32>
    %501 = arith.addf %497, %500 : vector<2x16xf32>
    %502 = math.tanh %501 : vector<2x16xf32>
    %cst_131 = arith.constant 1.000000e+00 : f32
    %503 = vector.broadcast %cst_131 : f32 to vector<2x16xf32>
    %504 = arith.subf %503, %496 : vector<2x16xf32>
    %505 = arith.mulf %504, %502 : vector<2x16xf32>
    %506 = arith.mulf %496, %435 : vector<2x16xf32>
    %507 = arith.addf %505, %506 : vector<2x16xf32>
    %508 = arith.index_cast %c6_i32 : i32 to index
    %c0_132 = arith.constant 0 : index
    %c0_133 = arith.constant 0 : index
    %509 = vector.load %arg10[%508, %c0_132, %c0_133] : memref<8x2x16xf32, #tpu.memory_space<vmem>>, vector<1x2x16xf32>
    %510 = vector.shape_cast %509 : vector<1x2x16xf32> to vector<2x16xf32>
    %511 = vector.shape_cast %475 : vector<2x16xf32> to vector<1x2x16xf32>
    tpu.vector_store %arg10[%508, %c0_132, %c0_133], %511 {strides = array<i32>} : memref<8x2x16xf32, #tpu.memory_space<vmem>>, vector<1x2x16xf32>,
    %c7_i32_134 = arith.constant 7 : i32
    %512 = arith.subi %c7_i32_134, %c6_i32 : i32
    %513 = arith.index_cast %512 : i32 to index
    %c0_135 = arith.constant 0 : index
    %c0_136 = arith.constant 0 : index
    %514 = vector.load %arg11[%513, %c0_135, %c0_136] : memref<8x2x16xf32, #tpu.memory_space<vmem>>, vector<1x2x16xf32>
    %515 = vector.shape_cast %514 : vector<1x2x16xf32> to vector<2x16xf32>
    %516 = vector.shape_cast %507 : vector<2x16xf32> to vector<1x2x16xf32>
    tpu.vector_store %arg11[%513, %c0_135, %c0_136], %516 {strides = array<i32>} : memref<8x2x16xf32, #tpu.memory_space<vmem>>, vector<1x2x16xf32>,
    %c7_i32_137 = arith.constant 7 : i32
    %517 = arith.index_cast %c7_i32_137 : i32 to index
    %c0_138 = arith.constant 0 : index
    %c0_139 = arith.constant 0 : index
    %518 = vector.load %arg1[%517, %c0_138, %c0_139] : memref<8x2x48xf32, #tpu.memory_space<vmem>>, vector<1x2x48xf32>
    %519 = vector.shape_cast %518 : vector<1x2x48xf32> to vector<2x48xf32>
    %cst_140 = arith.constant dense<0.000000e+00> : vector<2x48xf32>
    %520 = tpu.matmul %475, %3, %cst_140 {dimension_numbers = #tpu.dot_dimension_numbers<[1], [0], [0], [1], [0, 0, 1, 1], [], []>} : vector<2x16xf32>, vector<16x48xf32>, vector<2x48xf32> -> vector<2x48xf32>
    %521 = vector.extract_strided_slice %519 {offsets = [0, 0], sizes = [2, 16], strides = [1, 1]} : vector<2x48xf32> to vector<2x16xf32>
    %522 = vector.extract_strided_slice %520 {offsets = [0, 0], sizes = [2, 16], strides = [1, 1]} : vector<2x48xf32> to vector<2x16xf32>
    %523 = arith.addf %521, %522 : vector<2x16xf32>
    %524 = arith.negf %523 : vector<2x16xf32>
    %525 = math.exp %524 : vector<2x16xf32>
    %cst_141 = arith.constant 1.000000e+00 : f32
    %526 = vector.broadcast %cst_141 : f32 to vector<2x16xf32>
    %527 = arith.addf %526, %525 : vector<2x16xf32>
    %528 = arith.divf %526, %527 : vector<2x16xf32>
    %529 = vector.extract_strided_slice %519 {offsets = [0, 16], sizes = [2, 16], strides = [1, 1]} : vector<2x48xf32> to vector<2x16xf32>
    %530 = vector.extract_strided_slice %520 {offsets = [0, 16], sizes = [2, 16], strides = [1, 1]} : vector<2x48xf32> to vector<2x16xf32>
    %531 = arith.addf %529, %530 : vector<2x16xf32>
    %532 = arith.negf %531 : vector<2x16xf32>
    %533 = math.exp %532 : vector<2x16xf32>
    %cst_142 = arith.constant 1.000000e+00 : f32
    %534 = vector.broadcast %cst_142 : f32 to vector<2x16xf32>
    %535 = arith.addf %534, %533 : vector<2x16xf32>
    %536 = arith.divf %534, %535 : vector<2x16xf32>
    %537 = vector.extract_strided_slice %519 {offsets = [0, 32], sizes = [2, 16], strides = [1, 1]} : vector<2x48xf32> to vector<2x16xf32>
    %538 = vector.extract_strided_slice %520 {offsets = [0, 32], sizes = [2, 16], strides = [1, 1]} : vector<2x48xf32> to vector<2x16xf32>
    %539 = arith.addf %538, %7 : vector<2x16xf32>
    %540 = arith.mulf %528, %539 : vector<2x16xf32>
    %541 = arith.addf %537, %540 : vector<2x16xf32>
    %542 = math.tanh %541 : vector<2x16xf32>
    %cst_143 = arith.constant 1.000000e+00 : f32
    %543 = vector.broadcast %cst_143 : f32 to vector<2x16xf32>
    %544 = arith.subf %543, %536 : vector<2x16xf32>
    %545 = arith.mulf %544, %542 : vector<2x16xf32>
    %546 = arith.mulf %536, %475 : vector<2x16xf32>
    %547 = arith.addf %545, %546 : vector<2x16xf32>
    %c7_i32_144 = arith.constant 7 : i32
    %548 = arith.subi %c7_i32_144, %c7_i32_137 : i32
    %549 = arith.index_cast %548 : i32 to index
    %c0_145 = arith.constant 0 : index
    %c0_146 = arith.constant 0 : index
    %550 = vector.load %arg2[%549, %c0_145, %c0_146] : memref<8x2x48xf32, #tpu.memory_space<vmem>>, vector<1x2x48xf32>
    %551 = vector.shape_cast %550 : vector<1x2x48xf32> to vector<2x48xf32>
    %cst_147 = arith.constant dense<0.000000e+00> : vector<2x48xf32>
    %552 = tpu.matmul %507, %4, %cst_147 {dimension_numbers = #tpu.dot_dimension_numbers<[1], [0], [0], [1], [0, 0, 1, 1], [], []>} : vector<2x16xf32>, vector<16x48xf32>, vector<2x48xf32> -> vector<2x48xf32>
    %553 = vector.extract_strided_slice %551 {offsets = [0, 0], sizes = [2, 16], strides = [1, 1]} : vector<2x48xf32> to vector<2x16xf32>
    %554 = vector.extract_strided_slice %552 {offsets = [0, 0], sizes = [2, 16], strides = [1, 1]} : vector<2x48xf32> to vector<2x16xf32>
    %555 = arith.addf %553, %554 : vector<2x16xf32>
    %556 = arith.negf %555 : vector<2x16xf32>
    %557 = math.exp %556 : vector<2x16xf32>
    %cst_148 = arith.constant 1.000000e+00 : f32
    %558 = vector.broadcast %cst_148 : f32 to vector<2x16xf32>
    %559 = arith.addf %558, %557 : vector<2x16xf32>
    %560 = arith.divf %558, %559 : vector<2x16xf32>
    %561 = vector.extract_strided_slice %551 {offsets = [0, 16], sizes = [2, 16], strides = [1, 1]} : vector<2x48xf32> to vector<2x16xf32>
    %562 = vector.extract_strided_slice %552 {offsets = [0, 16], sizes = [2, 16], strides = [1, 1]} : vector<2x48xf32> to vector<2x16xf32>
    %563 = arith.addf %561, %562 : vector<2x16xf32>
    %564 = arith.negf %563 : vector<2x16xf32>
    %565 = math.exp %564 : vector<2x16xf32>
    %cst_149 = arith.constant 1.000000e+00 : f32
    %566 = vector.broadcast %cst_149 : f32 to vector<2x16xf32>
    %567 = arith.addf %566, %565 : vector<2x16xf32>
    %568 = arith.divf %566, %567 : vector<2x16xf32>
    %569 = vector.extract_strided_slice %551 {offsets = [0, 32], sizes = [2, 16], strides = [1, 1]} : vector<2x48xf32> to vector<2x16xf32>
    %570 = vector.extract_strided_slice %552 {offsets = [0, 32], sizes = [2, 16], strides = [1, 1]} : vector<2x48xf32> to vector<2x16xf32>
    %571 = arith.addf %570, %10 : vector<2x16xf32>
    %572 = arith.mulf %560, %571 : vector<2x16xf32>
    %573 = arith.addf %569, %572 : vector<2x16xf32>
    %574 = math.tanh %573 : vector<2x16xf32>
    %cst_150 = arith.constant 1.000000e+00 : f32
    %575 = vector.broadcast %cst_150 : f32 to vector<2x16xf32>
    %576 = arith.subf %575, %568 : vector<2x16xf32>
    %577 = arith.mulf %576, %574 : vector<2x16xf32>
    %578 = arith.mulf %568, %507 : vector<2x16xf32>
    %579 = arith.addf %577, %578 : vector<2x16xf32>
    %580 = arith.index_cast %c7_i32_137 : i32 to index
    %c0_151 = arith.constant 0 : index
    %c0_152 = arith.constant 0 : index
    %581 = vector.load %arg10[%580, %c0_151, %c0_152] : memref<8x2x16xf32, #tpu.memory_space<vmem>>, vector<1x2x16xf32>
    %582 = vector.shape_cast %581 : vector<1x2x16xf32> to vector<2x16xf32>
    %583 = vector.shape_cast %547 : vector<2x16xf32> to vector<1x2x16xf32>
    tpu.vector_store %arg10[%580, %c0_151, %c0_152], %583 {strides = array<i32>} : memref<8x2x16xf32, #tpu.memory_space<vmem>>, vector<1x2x16xf32>,
    %c7_i32_153 = arith.constant 7 : i32
    %584 = arith.subi %c7_i32_153, %c7_i32_137 : i32
    %585 = arith.index_cast %584 : i32 to index
    %c0_154 = arith.constant 0 : index
    %c0_155 = arith.constant 0 : index
    %586 = vector.load %arg11[%585, %c0_154, %c0_155] : memref<8x2x16xf32, #tpu.memory_space<vmem>>, vector<1x2x16xf32>
    %587 = vector.shape_cast %586 : vector<1x2x16xf32> to vector<2x16xf32>
    %588 = vector.shape_cast %579 : vector<2x16xf32> to vector<1x2x16xf32>
    tpu.vector_store %arg11[%585, %c0_154, %c0_155], %588 {strides = array<i32>} : memref<8x2x16xf32, #tpu.memory_space<vmem>>, vector<1x2x16xf32>,
    %c8_i32 = arith.constant 8 : i32
    %c0_156 = arith.constant 0 : index
    %c0_157 = arith.constant 0 : index
    %589 = vector.load %arg13[%c0_156, %c0_157] : memref<2x16xf32, #tpu.memory_space<vmem>>, vector<2x16xf32>
    tpu.vector_store %arg13[%c0_156, %c0_157], %547 {strides = array<i32>} : memref<2x16xf32, #tpu.memory_space<vmem>>, vector<2x16xf32>,
    %c0_158 = arith.constant 0 : index
    %c0_159 = arith.constant 0 : index
    %590 = vector.load %arg14[%c0_158, %c0_159] : memref<2x16xf32, #tpu.memory_space<vmem>>, vector<2x16xf32>
    tpu.vector_store %arg14[%c0_158, %c0_159], %579 {strides = array<i32>} : memref<2x16xf32, #tpu.memory_space<vmem>>, vector<2x16xf32>,
    %c0_i32_160 = arith.constant 0 : i32
    %591 = arith.cmpi eq, %arg0, %c0_i32_160 : i32
    %592 = arith.extui %591 : i1 to i32
    %c0_i32_161 = arith.constant 0 : i32
    %593 = arith.cmpi ne, %592, %c0_i32_161 : i32
    scf.if %593 {
      %c0_162 = arith.constant 0 : index
      %c0_163 = arith.constant 0 : index
      %594 = vector.load %arg7[%c0_162, %c0_163] : memref<16x16xf32, #tpu.memory_space<vmem>>, vector<16x16xf32>
      %cst_164 = arith.constant dense<0.000000e+00> : vector<2x16xf32>
      %595 = tpu.matmul %547, %594, %cst_164 {dimension_numbers = #tpu.dot_dimension_numbers<[1], [0], [0], [1], [0, 0, 1, 1], [], []>} : vector<2x16xf32>, vector<16x16xf32>, vector<2x16xf32> -> vector<2x16xf32>
      %c0_165 = arith.constant 0 : index
      %c0_166 = arith.constant 0 : index
      %596 = vector.load %arg8[%c0_165, %c0_166] : memref<16x16xf32, #tpu.memory_space<vmem>>, vector<16x16xf32>
      %cst_167 = arith.constant dense<0.000000e+00> : vector<2x16xf32>
      %597 = tpu.matmul %579, %596, %cst_167 {dimension_numbers = #tpu.dot_dimension_numbers<[1], [0], [0], [1], [0, 0, 1, 1], [], []>} : vector<2x16xf32>, vector<16x16xf32>, vector<2x16xf32> -> vector<2x16xf32>
      %598 = arith.addf %595, %597 : vector<2x16xf32>
      %c0_168 = arith.constant 0 : index
      %c0_169 = arith.constant 0 : index
      %599 = vector.load %arg9[%c0_168, %c0_169] : memref<1x16xf32, #tpu.memory_space<vmem>>, vector<1x16xf32>
      %600 = vector.broadcast %599 : vector<1x16xf32> to vector<2x16xf32>
      %601 = arith.addf %598, %600 : vector<2x16xf32>
      %602 = math.tanh %601 : vector<2x16xf32>
      %c0_170 = arith.constant 0 : index
      %c0_171 = arith.constant 0 : index
      %603 = vector.load %arg12[%c0_170, %c0_171] : memref<2x16xf32, #tpu.memory_space<vmem>>, vector<2x16xf32>
      tpu.vector_store %arg12[%c0_170, %c0_171], %602 {strides = array<i32>} : memref<2x16xf32, #tpu.memory_space<vmem>>, vector<2x16xf32>,
    } else {
    }
    return
  }
  func.func @transform_0(%arg0: i32) -> (i32, i32, i32) {
    %c0_i32 = arith.constant 0 : i32
    %c0_i32_0 = arith.constant 0 : i32
    %c0_i32_1 = arith.constant 0 : i32
    return %arg0, %c0_i32, %c0_i32_0 : i32, i32, i32
  }
  func.func @transform_1(%arg0: i32) -> (i32, i32, i32) {
    %c0_i32 = arith.constant 0 : i32
    %0 = arith.subi %c0_i32, %arg0 : i32
    %c0_i32_0 = arith.constant 0 : i32
    %c0_i32_1 = arith.constant 0 : i32
    %c0_i32_2 = arith.constant 0 : i32
    return %0, %c0_i32_0, %c0_i32_1 : i32, i32, i32
  }
  func.func @transform_2(%arg0: i32) -> (i32, i32) {
    %c0_i32 = arith.constant 0 : i32
    %c0_i32_0 = arith.constant 0 : i32
    %c0_i32_1 = arith.constant 0 : i32
    return %c0_i32, %c0_i32_0 : i32, i32
  }
  func.func @transform_3(%arg0: i32) -> (i32, i32) {
    %c0_i32 = arith.constant 0 : i32
    %c0_i32_0 = arith.constant 0 : i32
    %c0_i32_1 = arith.constant 0 : i32
    return %c0_i32, %c0_i32_0 : i32, i32
  }
  func.func @transform_4(%arg0: i32) -> (i32, i32) {
    %c0_i32 = arith.constant 0 : i32
    %c0_i32_0 = arith.constant 0 : i32
    %c0_i32_1 = arith.constant 0 : i32
    return %c0_i32, %c0_i32_0 : i32, i32
  }
  func.func @transform_5(%arg0: i32) -> (i32, i32) {
    %c0_i32 = arith.constant 0 : i32
    %c0_i32_0 = arith.constant 0 : i32
    %c0_i32_1 = arith.constant 0 : i32
    return %c0_i32, %c0_i32_0 : i32, i32
  }
  func.func @transform_6(%arg0: i32) -> (i32, i32) {
    %c0_i32 = arith.constant 0 : i32
    %c0_i32_0 = arith.constant 0 : i32
    %c0_i32_1 = arith.constant 0 : i32
    return %c0_i32, %c0_i32_0 : i32, i32
  }
  func.func @transform_7(%arg0: i32) -> (i32, i32) {
    %c0_i32 = arith.constant 0 : i32
    %c0_i32_0 = arith.constant 0 : i32
    %c0_i32_1 = arith.constant 0 : i32
    return %c0_i32, %c0_i32_0 : i32, i32
  }
  func.func @transform_8(%arg0: i32) -> (i32, i32) {
    %c0_i32 = arith.constant 0 : i32
    %c0_i32_0 = arith.constant 0 : i32
    %c0_i32_1 = arith.constant 0 : i32
    return %c0_i32, %c0_i32_0 : i32, i32
  }
  func.func @transform_9(%arg0: i32) -> (i32, i32, i32) {
    %c0_i32 = arith.constant 0 : i32
    %c0_i32_0 = arith.constant 0 : i32
    %c0_i32_1 = arith.constant 0 : i32
    return %arg0, %c0_i32, %c0_i32_0 : i32, i32, i32
  }
  func.func @transform_10(%arg0: i32) -> (i32, i32, i32) {
    %c0_i32 = arith.constant 0 : i32
    %0 = arith.subi %c0_i32, %arg0 : i32
    %c0_i32_0 = arith.constant 0 : i32
    %c0_i32_1 = arith.constant 0 : i32
    %c0_i32_2 = arith.constant 0 : i32
    return %0, %c0_i32_0, %c0_i32_1 : i32, i32, i32
  }
  func.func @transform_11(%arg0: i32) -> (i32, i32) {
    %c0_i32 = arith.constant 0 : i32
    %c0_i32_0 = arith.constant 0 : i32
    %c0_i32_1 = arith.constant 0 : i32
    return %c0_i32, %c0_i32_0 : i32, i32
  }
}

</mosaic_0001>

<bundles_post_ra>
// kernel: tpu_custom_call.1
= control target key start
LH: loop header
LB: loop body
LE: loop exit
PB: predicated region body
PF: predicated region fallthrough
CT: control target
= control target key end

     0   :  { %17 = vsyncpa [#allocation5], 0  ;;  %s2145_s0 = inlined_call_operand.hbm [shape: f32[8,2,48], index: 0, kind: input, shape index: {}]   ;;  %s2146_s1 = inlined_call_operand.hbm [shape: f32[8,2,48], index: 1, kind: input, shape index: {}]   ;;  %s2147_s2 = inlined_call_operand.hbm [shape: f32[16,48], index: 2, kind: input, shape index: {}]   ;;  %s2148_s3 = inlined_call_operand.hbm [shape: f32[16,48], index: 3, kind: input, shape index: {}]   ;;  %s2149_s4 = inlined_call_operand.vmem [shape: f32[1,16], index: 4, kind: input, shape index: {}]   ;;  %s2150_s5 = inlined_call_operand.vmem [shape: f32[1,16], index: 5, kind: input, shape index: {}]   ;;  %s2151_s6 = inlined_call_operand.hbm [shape: f32[16,16], index: 6, kind: input, shape index: {}]   ;;  %s2152_s7 = inlined_call_operand.hbm [shape: f32[16,16], index: 7, kind: input, shape index: {}]   ;;  %s2153_s8 = inlined_call_operand.vmem [shape: f32[1,16], index: 8, kind: input, shape index: {}]   ;;  %s2154_s9 = inlined_call_operand.hbm [shape: f32[8,2,16], index: 9, kind: output, shape index: {0}]   ;;  %s2155_s10 = inlined_call_operand.hbm [shape: f32[8,2,16], index: 10, kind: output, shape index: {1}]   ;;  %s2156_s11 = inlined_call_operand.hbm [shape: f32[2,16], index: 11, kind: output, shape index: {2}]  }
   0x1   :  { %18 = vsyncpa [#allocation8], 0 }
   0x2   :  { %19 = vsyncpa [#allocation11], 0 }
   0x3   :  { %20 = vsyncpa [#allocation14], 0 }
   0x4   :  { %21 = vsyncpa [#allocation6], 0 }
   0x5   :  { %22 = vsyncpa [#allocation17], 0  ;;  %s44_s19 = sshll.u32 %s2146_s1, 4  ;;  %s1793_s20 = smov [#allocation7]   ;;  %s45_s19 = int_to_ptr.hbm [resolvable:$true] %s44_s19 }
   0x6   :  { %s46_s21 = sshll.u32 %s1793_s20, 4  ;;  %s1794_s22 = smov 32   ;;  %s47_s21 = int_to_ptr.vmem [resolvable:$true] %s46_s21 }
   0x7   :  { %s1795_s23 = smov 2   ;;  %s70_s26 = sshll.u32 %s2148_s3, 4  ;;  %s71_s26 = int_to_ptr.hbm [resolvable:$true] %s70_s26 }
   0x8   :  { %52 = dma.hbm_to_vmem [thread:$0]  %s45_s19, 256, %s47_s21, [#allocation8], %s1794_s22, %s1794_s22, %s1795_s23  }
   0x9   :  { %s1796_s27 = smov [#allocation10]   ;;  %s27_s1 = sshll.u32 %s2145_s0, 4  ;;  %s28_s1 = int_to_ptr.hbm [resolvable:$true] %s27_s1 }
   0xa   :  { %s72_s28 = sshll.u32 %s1796_s27, 4  ;;  %s1797_s12 = smov 128   ;;  %s73_s28 = int_to_ptr.vmem [resolvable:$true] %s72_s28 }
   0xb   :  { %s1798_s13 = smov 8   ;;  %s57_s16 = sshll.u32 %s2147_s2, 4  ;;  %s58_s16 = int_to_ptr.hbm [resolvable:$true] %s57_s16 }
   0xc   :  { %78 = dma.hbm_to_vmem [thread:$0]  %s71_s26, 256, %s73_s28, [#allocation11], %s1797_s12, %s1797_s12, %s1798_s13  }
   0xd   :  { %s1799_s17 = smov [#allocation4]   ;;  %s1800_s3 = smov [#allocation9]  }
   0xe   :  { %s29_s18 = sshll.u32 %s1799_s17, 4  ;;  %s59_s19 = sshll.u32 %s1800_s3, 4  ;;  %s30_s18 = int_to_ptr.vmem [resolvable:$true] %s29_s18  ;;  %s60_s19 = int_to_ptr.vmem [resolvable:$true] %s59_s19 }
   0xf   :  { %35 = dma.hbm_to_vmem [thread:$0]  %s28_s1, 256, %s30_s18, [#allocation5], %s1794_s22, %s1794_s22, %s1795_s23  }
  0x10   :  { %s87_s21 = sshll.u32 %s2151_s6, 4  ;;  %s100_s2 = sshll.u32 %s2152_s7, 4  ;;  %s88_s21 = int_to_ptr.hbm [resolvable:$true] %s87_s21  ;;  %s101_s2 = int_to_ptr.hbm [resolvable:$true] %s100_s2 }
  0x11   :  { %65 = dma.hbm_to_vmem [thread:$0]  %s58_s16, 256, %s60_s19, [#allocation8], %s1797_s12, %s1797_s12, %s1798_s13  }
  0x12   :  { %s1801_s26 = smov [#allocation12]   ;;  %s1802_s28 = smov [#allocation13]  }
  0x13   :  { %s89_s27 = sshll.u32 %s1801_s26, 4  ;;  %s102_s29 = sshll.u32 %s1802_s28, 4  ;;  %s90_s27 = int_to_ptr.vmem [resolvable:$true] %s89_s27  ;;  %s103_s29 = int_to_ptr.vmem [resolvable:$true] %s102_s29 }
  0x14   :  { %95 = dma.hbm_to_vmem [thread:$0]  %s88_s21, 256, %s90_s27, [#allocation11], %s1797_s12, %s1797_s12, %s1798_s13  }
  0x15   :  { %108 = dma.hbm_to_vmem [thread:$0]  %s101_s2, 256, %s103_s29, [#allocation14], %s1797_s12, %s1797_s12, %s1798_s13  }
  0x16   :  { %1781 = dma.done.wait [#allocation5], 256  }
  0x17   :  { %1782 = vsyncadd [#allocation5], 4294967040 }
  0x18   :  { %1783 = dma.done.wait [#allocation8], 512  }
  0x19   :  { %1784 = vsyncadd [#allocation8], 4294966784 }
  0x1a   :  { %1785 = dma.done.wait [#allocation11], 512  }
  0x1b   :  { %1786 = vsyncadd [#allocation11], 4294966784 }
  0x1c   :  { %1787 = dma.done.wait [#allocation14], 256  }
  0x1d   :  { %1788 = vsyncadd [#allocation14], 4294967040  ;;  %vm143_vm0 = vcmask 123904   ;;  %v1803_v0 = vmov 0.0   ;;  %v1896_v1 = vld [vmem:[#allocation9 + $0x8] sm:$0xff]  ;;  %v1898_v2 = vld [vmem:[#allocation9] sm:$0xff] }
  0x1e   :  { %144 = vst.msk [vmem:[#allocation2] sm:$0x3] %vm143_vm0, %v1803_v0  ;;  %v1900_v3 = vld [vmem:[#allocation10 + $0x8] sm:$0xff]  ;;  %177 = vmatpush.msra.mxu0 %v1896_v1  ;;  %vm159_vm1 = vcmask 130048   ;;  %v1904_v5 = vld [vmem:[#allocation10] sm:$0xff]  ;;  %330 = vmatpush.msra.mxu2 %v1896_v1  ;;  %s1805_s1 = smov 16  }
  0x1f   :  { %145 = vst.msk [vmem:[#allocation3] sm:$0x3] %vm143_vm0, %v1803_v0  ;;  %248 = vmatpush.msra.mxu1 %v1900_v3  ;;  %v1464_v7 = vld [vmem:[%s2149_s4] ss:$0 sm:$0xff]  ;;  %394 = vmatpush.msra.mxu3 %v1900_v3  ;;  %v158_v15 = vld [vmem:[#allocation4] sm:$0x3] }
  0x20   :  { %178 = vmatpush.msra.mxu0 %v1898_v2  ;;  %203 = vrot.lane.b32.xlu0 %v1464_v7, %s1794_s22  ;;  %v1465_v8 = vld [vmem:[%s2150_s5] ss:$0 sm:$0xff]  ;;  %s1804_s5 = smov 96   ;;  %v230_v18 = vld [vmem:[#allocation7 + $0xe] sm:$0x3]  ;;  %s1806_s12 = smov 112  }
  0x21   :  { %249 = vmatpush.msra.mxu1 %v1904_v5  ;;  %395 = vmatpush.msra.mxu3 %v1904_v5  ;;  %s1807_s13 = smov [#allocation16]   ;;  %s1373_s17 = sshll.u32 %s2155_s10, 4  ;;  %s1374_s17 = int_to_ptr.hbm [resolvable:$true] %s1373_s17 }
  0x22   :  { %331 = vmatpush.msra.mxu2 %v1898_v2  ;;  %470 = vmatpush.msrb.mxu0 %v1896_v1  ;;  %s1371_s14 = sshll.u32 %s1807_s13, 4  ;;  %s1356_s19 = sshll.u32 %s2154_s9, 4  ;;  %s1372_s14 = int_to_ptr.vmem [resolvable:$true] %s1371_s14  ;;  %s1357_s19 = int_to_ptr.hbm [resolvable:$true] %s1356_s19 }
  0x23   :  { %534 = vmatpush.msrb.mxu1 %v1900_v3  ;;  %674 = vmatpush.msrb.mxu3 %v1900_v3  ;;  %s1808_s0 = smov [#allocation15]   ;;  %s1809_s24 = smov [#allocation18]  }
  0x24   :  { %610 = vmatpush.msrb.mxu2 %v1896_v1  ;;  %471 = vmatpush.msrb.mxu0 %v1898_v2  ;;  %s1354_s20 = sshll.u32 %s1808_s0, 4  ;;  %s1385_s25 = sshll.u32 %s1809_s24, 4  ;;  %s1355_s20 = int_to_ptr.vmem [resolvable:$true] %s1354_s20  ;;  %s1386_s25 = int_to_ptr.vmem [resolvable:$true] %s1385_s25 }
  0x25   :  { %v156_v4 = vld [vmem:[#allocation2] sm:$0x3]  ;;  %535 = vmatpush.msrb.mxu1 %v1904_v5  ;;  %675 = vmatpush.msrb.mxu3 %v1904_v5  ;;  %s1387_s26 = sshll.u32 %s2156_s11, 4  ;;  %s1388_s26 = int_to_ptr.hbm [resolvable:$true] %s1387_s26 }
  0x26   :  { %v1906_v6 = vld [vmem:[#allocation3] sm:$0x3]  ;;  %1413 = vmatmul.msk.f32.vlgmr.msra.gmra.mxu0 %vm159_vm1, %v156_v4  ;;  %611 = vmatpush.msrb.mxu2 %v1898_v2 }
  0x27   :  { %1415 = vmatmul.msk.f32.vlgmr.msra.gmra.mxu1 %vm159_vm1, %v1906_v6  ;;  %750 = vmatpush.msra.mxu0 %v1896_v1 }
  0x28   :  { %814 = vmatpush.msra.mxu1 %v1900_v3  ;;  %274 = vrot.lane.b32.xlu0 %v1465_v8, %s1794_s22 }
  0x29   :  { %751 = vmatpush.msra.mxu0 %v1898_v2 }
  0x2a   :  { %815 = vmatpush.msra.mxu1 %v1904_v5 }
  0x92   :  { %v1937_v9 = vpop.permute.xlu0 %203 }
  0x9a   :  { %v1941_v12 = vpop.permute.xlu0 %274 }
  0xa3   :  { %v180_v10 = vpop.f32.mrf.mxu0 }
  0xa4   :  { %v206_v11 = vadd.f32 %v1937_v9, %v180_v10  ;;  %v251_v13 = vpop.f32.mrf.mxu1  ;;  %v183_v16 = vadd.f32 %v180_v10, %v158_v15 }
  0xa5   :  { %v277_v14 = vadd.f32 %v1941_v12, %v251_v13  ;;  %v254_v19 = vadd.f32 %v251_v13, %v230_v18 }
  0xa6   :  { %208 = vrot.lane.b32.xlu1 %v206_v11, %s1804_s5  ;;  %v1414_v17 = vmul.f32 -1.442695, %v183_v16 }
  0xa7   :  { %v1416_v20 = vmul.f32 -1.442695, %v254_v19 }
  0xa8   :  { %1467 = vpow2.f32 %v1414_v17 }
  0xa9   :  { %1469 = vpow2.f32 %v1416_v20 }
  0xae   :  { %279 = vrot.lane.b32.xlu1 %v277_v14, %s1804_s5  ;;  %v1468_v21 = vpop.eup %1467 }
  0xaf   :  { %v187_v22 = vadd.f32 1.0, %v1468_v21  ;;  %v1470_v23 = vpop.eup %1469 }
  0xb0   :  { %v258_v24 = vadd.f32 1.0, %v1470_v23 }
  0xb1   :  { %1471 = vrcp.f32 %v187_v22  ;;  %v199_v33 = vand.u32 2147483648, %v187_v22  ;;  %vm193_vm3 = vweird.f32 %v187_v22  ;;  %v197_v34 = vand.u32 2147483647, %v187_v22 }
  0xb2   :  { %1473 = vrcp.f32 %v258_v24  ;;  %vm264_vm6 = vweird.f32 %v258_v24  ;;  %v270_v40 = vand.u32 2147483648, %v258_v24  ;;  %v268_v43 = vand.u32 2147483647, %v258_v24 }
  0xb3   :  { %v200_v37 = vor.u32 1.1754944e-38, %v199_v33  ;;  %vm198_vm5 = vcmp.eq.f32.partialorder %v197_v34, 8.507059e+37 }
  0xb4   :  { %v271_v44 = vor.u32 1.1754944e-38, %v270_v40  ;;  %vm269_vm9 = vcmp.eq.f32.partialorder %v268_v43, 8.507059e+37 }
  0xb6   :  { %224 = vrot.lane.b32.xlu1 %v156_v4, %s1805_s1 }
  0xb7   :  { %v1472_v25 = vpop.eup %1471 }
  0xb8   :  { %v189_v26 = vmul.f32 %v1472_v25, %v187_v22  ;;  %v1474_v28 = vpop.eup %1473  ;;  %vm194_vm2 = vweird.f32 %v1472_v25 }
  0xb9   :  { %v260_v30 = vmul.f32 %v1474_v28, %v258_v24  ;;  %vm195_vm4 = vmor %vm193_vm3, %vm194_vm2  ;;  %vm265_vm7 = vweird.f32 %v1474_v28 }
  0xba   :  { %v190_v27 = vsub.f32 1.0, %v189_v26  ;;  %vm266_vm8 = vmor %vm264_vm6, %vm265_vm7 }
  0xbb   :  { %v261_v32 = vsub.f32 1.0, %v260_v30 }
  0xbc   :  { %v191_v29 = vmul.f32 %v1472_v25, %v190_v27 }
  0xbd   :  { %v262_v36 = vmul.f32 %v1474_v28, %v261_v32 }
  0xbe   :  { %v192_v31 = vadd.f32 %v1472_v25, %v191_v29 }
  0xbf   :  { %v263_v42 = vadd.f32 %v1474_v28, %v262_v36 }
  0xc0   :  { %v196_v35 = vsel %vm195_vm4, %v1472_v25, %v192_v31 }
  0xc1   :  { %v201_v39 = vsel %vm198_vm5, %v200_v37, %v196_v35  ;;  %v267_v45 = vsel %vm266_vm8, %v1474_v28, %v263_v42 }
  0xc2   :  { %v272_v46 = vsel %vm269_vm9, %v271_v44, %v267_v45  ;;  %v218_v56 = vsub.f32 1.0, %v201_v39 }
  0xc3   :  { %v289_v62 = vsub.f32 1.0, %v272_v46 }
 0x118   :  { %v209_v38 = vpop.permute.xlu1 %208 }
 0x119   :  { %v211_v41 = vmul.f32 %v209_v38, %v201_v39 }
 0x11b   :  { %213 = vrot.lane.b32.xlu2 %v211_v41, %s1794_s22 }
 0x120   :  { %v280_v47 = vpop.permute.xlu1 %279 }
 0x121   :  { %v282_v48 = vmul.f32 %v280_v47, %v272_v46 }
 0x123   :  { %284 = vrot.lane.b32.xlu2 %v282_v48, %s1794_s22 }
 0x128   :  { %v225_v55 = vpop.permute.xlu1 %224 }
 0x129   :  { %v227_v58 = vmul.f32 %v225_v55, %v201_v39 }
 0x175   :  { %v214_v49 = vpop.permute.xlu2 %213 }
 0x176   :  { %v216_v50 = vadd.f32 %v214_v49, %v158_v15  ;;  %v377_v15 = vld [vmem:[#allocation7 + $0xc] sm:$0x3] }
 0x178   :  { %1475 = vtanh.f32 %v216_v50 }
 0x17d   :  { %v285_v51 = vpop.permute.xlu2 %284 }
 0x17e   :  { %v1476_v52 = vpop.eup %1475  ;;  %v287_v53 = vadd.f32 %v285_v51, %v230_v18  ;;  %v313_v18 = vld [vmem:[#allocation4 + $0x2] sm:$0x3] }
 0x17f   :  { %220 = vrot.lane.b32.xlu0 %v1476_v52, %s1806_s12 }
 0x180   :  { %1477 = vtanh.f32 %v287_v53 }
 0x186   :  { %v1478_v54 = vpop.eup %1477 }
 0x187   :  { %295 = vrot.lane.b32.xlu0 %v1906_v6, %s1805_s1  ;;  %291 = vrot.lane.b32.xlu2 %v1478_v54, %s1806_s12 }
 0x1e1   :  { %v292_v61 = vpop.permute.xlu2 %291 }
 0x1e2   :  { %v294_v0 = vmul.f32 %v292_v61, %v289_v62 }
 0x1f1   :  { %v221_v57 = vpop.permute.xlu0 %220 }
 0x1f2   :  { %v223_v59 = vmul.f32 %v221_v57, %v218_v56 }
 0x1f4   :  { %v1952_v60 = vadd.f32 %v227_v58, %v223_v59 }
 0x1f6   :  { %301 = vrot.lane.b32.xlu1 %v1952_v60, %s1806_s12 }
 0x1f9   :  { %v296_v63 = vpop.permute.xlu0 %295 }
 0x1fa   :  { %v298_v4 = vmul.f32 %v296_v63, %v272_v46 }
 0x1fc   :  { %v1956_v7 = vadd.f32 %v298_v4, %v294_v0 }
 0x1fe   :  { %307 = vrot.lane.b32.xlu2 %v1956_v7, %s1806_s12 }
 0x258   :  { %v308_v6 = vpop.permute.xlu2 %307 }
 0x259   :  { %311 = vst.msk [vmem:[#allocation16 + $0xe] sm:$0x3] %vm143_vm0, %v308_v6  ;;  %1419 = vmatmul.msk.f32.vlgmr.msra.gmra.mxu3 %vm159_vm1, %v308_v6 }
 0x25a   :  { %954 = vmatpush.msra.mxu3 %v1900_v3 }
 0x25c   :  { %955 = vmatpush.msra.mxu3 %v1904_v5 }
 0x268   :  { %v302_v8 = vpop.permute.xlu1 %301 }
 0x269   :  { %305 = vst.msk [vmem:[#allocation15] sm:$0x3] %vm143_vm0, %v302_v8  ;;  %1417 = vmatmul.msk.f32.vlgmr.msra.gmra.mxu2 %vm159_vm1, %v302_v8 }
 0x26a   :  { %890 = vmatpush.msra.mxu2 %v1896_v1 }
 0x26c   :  { %891 = vmatpush.msra.mxu2 %v1898_v2 }
 0x2dc   :  { %v397_v10 = vpop.f32.mrf.mxu3 }
 0x2dd   :  { %v420_v11 = vadd.f32 %v397_v10, %v1941_v12  ;;  %v400_v16 = vadd.f32 %v397_v10, %v377_v15 }
 0x2df   :  { %422 = vrot.lane.b32.xlu1 %v420_v11, %s1804_s5  ;;  %v1420_v17 = vmul.f32 -1.442695, %v400_v16  ;;  %v517_v16 = vld [vmem:[#allocation7 + $0xa] sm:$0x3] }
 0x2e1   :  { %1479 = vpow2.f32 %v1420_v17 }
 0x2e7   :  { %v1480_v19 = vpop.eup %1479 }
 0x2e8   :  { %v404_v21 = vadd.f32 1.0, %v1480_v19 }
 0x2ea   :  { %1481 = vrcp.f32 %v404_v21  ;;  %v416_v31 = vand.u32 2147483648, %v404_v21  ;;  %vm410_vm11 = vweird.f32 %v404_v21  ;;  %v414_v32 = vand.u32 2147483647, %v404_v21 }
 0x2ec   :  { %v333_v13 = vpop.f32.mrf.mxu2  ;;  %v417_v35 = vor.u32 1.1754944e-38, %v416_v31  ;;  %vm415_vm13 = vcmp.eq.f32.partialorder %v414_v32, 8.507059e+37 }
 0x2ed   :  { %v356_v14 = vadd.f32 %v333_v13, %v1937_v9  ;;  %v336_v20 = vadd.f32 %v333_v13, %v313_v18  ;;  %v453_v13 = vld [vmem:[#allocation4 + $0x4] sm:$0x3] }
 0x2ef   :  { %358 = vrot.lane.b32.xlu0 %v356_v14, %s1804_s5  ;;  %v1418_v22 = vmul.f32 -1.442695, %v336_v20 }
 0x2f0   :  { %v1482_v23 = vpop.eup %1481 }
 0x2f1   :  { %1483 = vpow2.f32 %v1418_v22  ;;  %v406_v25 = vmul.f32 %v1482_v23, %v404_v21  ;;  %vm411_vm10 = vweird.f32 %v1482_v23 }
 0x2f2   :  { %vm412_vm12 = vmor %vm410_vm11, %vm411_vm10 }
 0x2f3   :  { %v407_v27 = vsub.f32 1.0, %v406_v25 }
 0x2f5   :  { %v408_v28 = vmul.f32 %v1482_v23, %v407_v27 }
 0x2f7   :  { %v1484_v24 = vpop.eup %1483  ;;  %v409_v29 = vadd.f32 %v1482_v23, %v408_v28 }
 0x2f8   :  { %v340_v26 = vadd.f32 1.0, %v1484_v24 }
 0x2f9   :  { %v413_v33 = vsel %vm412_vm12, %v1482_v23, %v409_v29 }
 0x2fa   :  { %1485 = vrcp.f32 %v340_v26  ;;  %v418_v37 = vsel %vm415_vm13, %v417_v35, %v413_v33  ;;  %v352_v42 = vand.u32 2147483648, %v340_v26  ;;  %vm346_vm15 = vweird.f32 %v340_v26 }
 0x2fb   :  { %v350_v43 = vand.u32 2147483647, %v340_v26  ;;  %v432_v55 = vsub.f32 1.0, %v418_v37  ;;  %v438_v57 = vmul.f32 %v418_v37, %v1956_v7 }
 0x2fc   :  { %v353_v45 = vor.u32 1.1754944e-38, %v352_v42 }
 0x2fd   :  { %vm351_vm3 = vcmp.eq.f32.partialorder %v350_v43, 8.507059e+37 }
 0x300   :  { %v1486_v30 = vpop.eup %1485 }
 0x301   :  { %v342_v34 = vmul.f32 %v1486_v30, %v340_v26  ;;  %vm347_vm14 = vweird.f32 %v1486_v30 }
 0x302   :  { %vm348_vm2 = vmor %vm346_vm15, %vm347_vm14 }
 0x303   :  { %v343_v39 = vsub.f32 1.0, %v342_v34 }
 0x305   :  { %v344_v40 = vmul.f32 %v1486_v30, %v343_v39 }
 0x307   :  { %v345_v41 = vadd.f32 %v1486_v30, %v344_v40 }
 0x309   :  { %v349_v44 = vsel %vm348_vm2, %v1486_v30, %v345_v41 }
 0x30a   :  { %v354_v46 = vsel %vm351_vm3, %v353_v45, %v349_v44 }
 0x30b   :  { %v368_v61 = vsub.f32 1.0, %v354_v46  ;;  %v374_v63 = vmul.f32 %v354_v46, %v1952_v60 }
 0x351   :  { %v423_v36 = vpop.permute.xlu1 %422 }
 0x352   :  { %v425_v38 = vmul.f32 %v423_v36, %v418_v37 }
 0x354   :  { %427 = vrot.lane.b32.xlu0 %v425_v38, %s1794_s22 }
 0x361   :  { %v359_v47 = vpop.permute.xlu0 %358 }
 0x362   :  { %v361_v48 = vmul.f32 %v359_v47, %v354_v46 }
 0x364   :  { %363 = vrot.lane.b32.xlu2 %v361_v48, %s1794_s22 }
 0x3be   :  { %v364_v49 = vpop.permute.xlu2 %363 }
 0x3bf   :  { %v366_v50 = vadd.f32 %v364_v49, %v313_v18 }
 0x3c1   :  { %1487 = vtanh.f32 %v366_v50 }
 0x3c6   :  { %v428_v51 = vpop.permute.xlu0 %427 }
 0x3c7   :  { %v1488_v52 = vpop.eup %1487  ;;  %v430_v53 = vadd.f32 %v428_v51, %v377_v15 }
 0x3c8   :  { %370 = vrot.lane.b32.xlu1 %v1488_v52, %s1806_s12 }
 0x3c9   :  { %1489 = vtanh.f32 %v430_v53 }
 0x3cf   :  { %v1490_v54 = vpop.eup %1489 }
 0x3d0   :  { %434 = vrot.lane.b32.xlu2 %v1490_v54, %s1806_s12 }
 0x42a   :  { %v435_v56 = vpop.permute.xlu2 %434 }
 0x42b   :  { %v437_v58 = vmul.f32 %v435_v56, %v432_v55 }
 0x42d   :  { %v1977_v59 = vadd.f32 %v438_v57, %v437_v58 }
 0x42f   :  { %447 = vrot.lane.b32.xlu1 %v1977_v59, %s1806_s12 }
 0x43a   :  { %v371_v62 = vpop.permute.xlu1 %370 }
 0x43b   :  { %v373_v0 = vmul.f32 %v371_v62, %v368_v61 }
 0x43d   :  { %v1982_v4 = vadd.f32 %v374_v63, %v373_v0 }
 0x43f   :  { %441 = vrot.lane.b32.xlu0 %v1982_v4, %s1806_s12 }
 0x4a1   :  { %v448_v6 = vpop.permute.xlu1 %447 }
 0x4a2   :  { %451 = vst.msk [vmem:[#allocation16 + $0xc] sm:$0x3] %vm143_vm0, %v448_v6  ;;  %1423 = vmatmul.msk.f32.vlgmr.msrb.gmra.mxu1 %vm159_vm1, %v448_v6 }
 0x4a3   :  { %1094 = vmatpush.msrb.mxu1 %v1900_v3 }
 0x4a5   :  { %1095 = vmatpush.msrb.mxu1 %v1904_v5 }
 0x4b1   :  { %v442_v7 = vpop.permute.xlu0 %441 }
 0x4b2   :  { %445 = vst.msk [vmem:[#allocation15 + $0x2] sm:$0x3] %vm143_vm0, %v442_v7  ;;  %1421 = vmatmul.msk.f32.vlgmr.msrb.gmra.mxu0 %vm159_vm1, %v442_v7 }
 0x4b3   :  { %1030 = vmatpush.msrb.mxu0 %v1896_v1 }
 0x4b5   :  { %1031 = vmatpush.msrb.mxu0 %v1898_v2 }
 0x51f   :  { %v537_v60 = vpop.f32.mrf.mxu1 }
 0x520   :  { %v560_v8 = vadd.f32 %v537_v60, %v1941_v12  ;;  %v540_v17 = vadd.f32 %v537_v60, %v517_v16 }
 0x522   :  { %562 = vrot.lane.b32.xlu0 %v560_v8, %s1804_s5  ;;  %v1424_v18 = vmul.f32 -1.442695, %v540_v17 }
 0x52f   :  { %v473_v10 = vpop.f32.mrf.mxu0 }
 0x530   :  { %v496_v11 = vadd.f32 %v473_v10, %v1937_v9  ;;  %v476_v14 = vadd.f32 %v473_v10, %v453_v13 }
 0x532   :  { %498 = vrot.lane.b32.xlu2 %v496_v11, %s1804_s5  ;;  %v1422_v15 = vmul.f32 -1.442695, %v476_v14  ;;  %v593_v11 = vld [vmem:[#allocation4 + $0x6] sm:$0x3] }
 0x534   :  { %1491 = vpow2.f32 %v1422_v15 }
 0x535   :  { %1493 = vpow2.f32 %v1424_v18 }
 0x53a   :  { %v1492_v19 = vpop.eup %1491 }
 0x53b   :  { %v480_v20 = vadd.f32 1.0, %v1492_v19  ;;  %v1494_v21 = vpop.eup %1493 }
 0x53c   :  { %v544_v22 = vadd.f32 1.0, %v1494_v21 }
 0x53d   :  { %1495 = vrcp.f32 %v480_v20  ;;  %v492_v31 = vand.u32 2147483648, %v480_v20  ;;  %vm486_vm5 = vweird.f32 %v480_v20  ;;  %v490_v32 = vand.u32 2147483647, %v480_v20 }
 0x53e   :  { %1497 = vrcp.f32 %v544_v22  ;;  %v556_v40 = vand.u32 2147483648, %v544_v22  ;;  %vm550_vm9 = vweird.f32 %v544_v22  ;;  %v554_v41 = vand.u32 2147483647, %v544_v22 }
 0x53f   :  { %v493_v35 = vor.u32 1.1754944e-38, %v492_v31  ;;  %vm491_vm7 = vcmp.eq.f32.partialorder %v490_v32, 8.507059e+37 }
 0x540   :  { %v557_v43 = vor.u32 1.1754944e-38, %v556_v40  ;;  %vm555_vm11 = vcmp.eq.f32.partialorder %v554_v41, 8.507059e+37 }
 0x543   :  { %v1496_v23 = vpop.eup %1495 }
 0x544   :  { %v482_v24 = vmul.f32 %v1496_v23, %v480_v20  ;;  %v1498_v26 = vpop.eup %1497  ;;  %vm487_vm4 = vweird.f32 %v1496_v23 }
 0x545   :  { %v546_v28 = vmul.f32 %v1498_v26, %v544_v22  ;;  %vm488_vm6 = vmor %vm486_vm5, %vm487_vm4  ;;  %vm551_vm8 = vweird.f32 %v1498_v26 }
 0x546   :  { %v483_v25 = vsub.f32 1.0, %v482_v24  ;;  %vm552_vm10 = vmor %vm550_vm9, %vm551_vm8 }
 0x547   :  { %v547_v30 = vsub.f32 1.0, %v546_v28 }
 0x548   :  { %v484_v27 = vmul.f32 %v1496_v23, %v483_v25 }
 0x549   :  { %v548_v34 = vmul.f32 %v1498_v26, %v547_v30 }
 0x54a   :  { %v485_v29 = vadd.f32 %v1496_v23, %v484_v27 }
 0x54b   :  { %v549_v39 = vadd.f32 %v1498_v26, %v548_v34 }
 0x54c   :  { %v489_v33 = vsel %vm488_vm6, %v1496_v23, %v485_v29 }
 0x54d   :  { %v494_v36 = vsel %vm491_vm7, %v493_v35, %v489_v33  ;;  %v553_v42 = vsel %vm552_vm10, %v1498_v26, %v549_v39 }
 0x54e   :  { %v558_v45 = vsel %vm555_vm11, %v557_v43, %v553_v42  ;;  %v508_v58 = vsub.f32 1.0, %v494_v36  ;;  %v514_v62 = vmul.f32 %v494_v36, %v1982_v4 }
 0x54f   :  { %v572_v53 = vsub.f32 1.0, %v558_v45  ;;  %v578_v55 = vmul.f32 %v558_v45, %v1977_v59 }
 0x58c   :  { %v499_v37 = vpop.permute.xlu2 %498 }
 0x58d   :  { %v501_v38 = vmul.f32 %v499_v37, %v494_v36 }
 0x58f   :  { %503 = vrot.lane.b32.xlu1 %v501_v38, %s1794_s22 }
 0x594   :  { %v563_v44 = vpop.permute.xlu0 %562 }
 0x595   :  { %v565_v46 = vmul.f32 %v563_v44, %v558_v45 }
 0x597   :  { %567 = vrot.lane.b32.xlu2 %v565_v46, %s1794_s22 }
 0x5f1   :  { %v568_v47 = vpop.permute.xlu2 %567 }
 0x5f2   :  { %v570_v48 = vadd.f32 %v568_v47, %v517_v16 }
 0x5f4   :  { %1499 = vtanh.f32 %v570_v48 }
 0x5fa   :  { %v1500_v49 = vpop.eup %1499 }
 0x5fb   :  { %574 = vrot.lane.b32.xlu1 %v1500_v49, %s1806_s12 }
 0x601   :  { %v504_v50 = vpop.permute.xlu1 %503 }
 0x602   :  { %v506_v51 = vadd.f32 %v504_v50, %v453_v13 }
 0x604   :  { %1501 = vtanh.f32 %v506_v51 }
 0x60a   :  { %v1502_v52 = vpop.eup %1501 }
 0x60b   :  { %510 = vrot.lane.b32.xlu0 %v1502_v52, %s1806_s12 }
 0x66d   :  { %v575_v54 = vpop.permute.xlu1 %574 }
 0x66e   :  { %v577_v56 = vmul.f32 %v575_v54, %v572_v53 }
 0x670   :  { %v2003_v57 = vadd.f32 %v578_v55, %v577_v56 }
 0x672   :  { %587 = vrot.lane.b32.xlu0 %v2003_v57, %s1806_s12 }
 0x67d   :  { %v511_v61 = vpop.permute.xlu0 %510 }
 0x67e   :  { %v513_v63 = vmul.f32 %v511_v61, %v508_v58 }
 0x680   :  { %v2008_v0 = vadd.f32 %v514_v62, %v513_v63 }
 0x682   :  { %581 = vrot.lane.b32.xlu2 %v2008_v0, %s1806_s12 }
 0x6dc   :  { %v582_v6 = vpop.permute.xlu2 %581 }
 0x6dd   :  { %585 = vst.msk [vmem:[#allocation15 + $0x4] sm:$0x3] %vm143_vm0, %v582_v6  ;;  %1425 = vmatmul.msk.f32.vlgmr.msrb.gmra.mxu2 %vm159_vm1, %v582_v6  ;;  %v797_v6 = vld [vmem:[#allocation7 + $0x6] sm:$0x3] }
 0x6de   :  { %1170 = vmatpush.msrb.mxu2 %v1896_v1  ;;  %v657_v1 = vld [vmem:[#allocation7 + $0x8] sm:$0x3] }
 0x6e0   :  { %1171 = vmatpush.msrb.mxu2 %v1898_v2 }
 0x6e4   :  { %v588_v59 = vpop.permute.xlu0 %587 }
 0x6e5   :  { %591 = vst.msk [vmem:[#allocation16 + $0xa] sm:$0x3] %vm143_vm0, %v588_v59  ;;  %1427 = vmatmul.msk.f32.vlgmr.msrb.gmra.mxu3 %vm159_vm1, %v588_v59 }
 0x6e6   :  { %1233 = vmatpush.msrb.mxu3 %v1900_v3 }
 0x6e8   :  { %1234 = vmatpush.msrb.mxu3 %v1904_v5 }
 0x760   :  { %v613_v4 = vpop.f32.mrf.mxu2 }
 0x761   :  { %v636_v7 = vadd.f32 %v613_v4, %v1937_v9  ;;  %v616_v14 = vadd.f32 %v613_v4, %v593_v11 }
 0x763   :  { %638 = vrot.lane.b32.xlu1 %v636_v7, %s1804_s5  ;;  %v1426_v15 = vmul.f32 -1.442695, %v616_v14  ;;  %v733_v7 = vld [vmem:[#allocation4 + $0x8] sm:$0x3] }
 0x768   :  { %v677_v60 = vpop.f32.mrf.mxu3 }
 0x769   :  { %v700_v8 = vadd.f32 %v677_v60, %v1941_v12  ;;  %v680_v2 = vadd.f32 %v677_v60, %v657_v1 }
 0x76b   :  { %702 = vrot.lane.b32.xlu2 %v700_v8, %s1804_s5  ;;  %v1428_v10 = vmul.f32 -1.442695, %v680_v2 }
 0x76d   :  { %1503 = vpow2.f32 %v1428_v10 }
 0x773   :  { %v1504_v13 = vpop.eup %1503 }
 0x774   :  { %v684_v3 = vadd.f32 1.0, %v1504_v13 }
 0x776   :  { %1505 = vrcp.f32 %v684_v3  ;;  %v696_v23 = vand.u32 2147483648, %v684_v3  ;;  %vm690_vm13 = vweird.f32 %v684_v3  ;;  %v694_v24 = vand.u32 2147483647, %v684_v3 }
 0x777   :  { %1507 = vpow2.f32 %v1426_v15 }
 0x778   :  { %v697_v27 = vor.u32 1.1754944e-38, %v696_v23  ;;  %vm695_vm15 = vcmp.eq.f32.partialorder %v694_v24, 8.507059e+37 }
 0x77c   :  { %v1506_v5 = vpop.eup %1505 }
 0x77d   :  { %v1508_v16 = vpop.eup %1507  ;;  %v686_v17 = vmul.f32 %v1506_v5, %v684_v3  ;;  %vm691_vm12 = vweird.f32 %v1506_v5 }
 0x77e   :  { %v620_v18 = vadd.f32 1.0, %v1508_v16  ;;  %vm692_vm14 = vmor %vm690_vm13, %vm691_vm12 }
 0x77f   :  { %v687_v19 = vsub.f32 1.0, %v686_v17 }
 0x780   :  { %1509 = vrcp.f32 %v620_v18  ;;  %v632_v34 = vand.u32 2147483648, %v620_v18  ;;  %vm626_vm3 = vweird.f32 %v620_v18  ;;  %v630_v35 = vand.u32 2147483647, %v620_v18 }
 0x781   :  { %v688_v20 = vmul.f32 %v1506_v5, %v687_v19 }
 0x782   :  { %v633_v37 = vor.u32 1.1754944e-38, %v632_v34  ;;  %vm631_vm5 = vcmp.eq.f32.partialorder %v630_v35, 8.507059e+37 }
 0x783   :  { %v689_v21 = vadd.f32 %v1506_v5, %v688_v20 }
 0x785   :  { %v693_v25 = vsel %vm692_vm14, %v1506_v5, %v689_v21 }
 0x786   :  { %v1510_v22 = vpop.eup %1509  ;;  %v698_v28 = vsel %vm695_vm15, %v697_v27, %v693_v25 }
 0x787   :  { %v622_v26 = vmul.f32 %v1510_v22, %v620_v18  ;;  %vm627_vm2 = vweird.f32 %v1510_v22  ;;  %v712_v52 = vsub.f32 1.0, %v698_v28  ;;  %v718_v54 = vmul.f32 %v698_v28, %v2003_v57 }
 0x788   :  { %vm628_vm4 = vmor %vm626_vm3, %vm627_vm2 }
 0x789   :  { %v623_v31 = vsub.f32 1.0, %v622_v26 }
 0x78b   :  { %v624_v32 = vmul.f32 %v1510_v22, %v623_v31 }
 0x78d   :  { %v625_v33 = vadd.f32 %v1510_v22, %v624_v32 }
 0x78f   :  { %v629_v36 = vsel %vm628_vm4, %v1510_v22, %v625_v33 }
 0x790   :  { %v634_v39 = vsel %vm631_vm5, %v633_v37, %v629_v36 }
 0x791   :  { %v648_v47 = vsub.f32 1.0, %v634_v39  ;;  %v654_v49 = vmul.f32 %v634_v39, %v2008_v0 }
 0x7c5   :  { %v703_v29 = vpop.permute.xlu2 %702 }
 0x7c6   :  { %v705_v30 = vmul.f32 %v703_v29, %v698_v28 }
 0x7c8   :  { %707 = vrot.lane.b32.xlu1 %v705_v30, %s1794_s22 }
 0x7d5   :  { %v639_v38 = vpop.permute.xlu1 %638 }
 0x7d6   :  { %v641_v40 = vmul.f32 %v639_v38, %v634_v39 }
 0x7d8   :  { %643 = vrot.lane.b32.xlu0 %v641_v40, %s1794_s22 }
 0x83a   :  { %v708_v41 = vpop.permute.xlu1 %707 }
 0x83b   :  { %v710_v42 = vadd.f32 %v708_v41, %v657_v1 }
 0x83d   :  { %1511 = vtanh.f32 %v710_v42 }
 0x843   :  { %v1512_v43 = vpop.eup %1511 }
 0x844   :  { %714 = vrot.lane.b32.xlu0 %v1512_v43, %s1806_s12 }
 0x84a   :  { %v644_v44 = vpop.permute.xlu0 %643 }
 0x84b   :  { %v646_v45 = vadd.f32 %v644_v44, %v593_v11 }
 0x84d   :  { %1513 = vtanh.f32 %v646_v45 }
 0x853   :  { %v1514_v46 = vpop.eup %1513 }
 0x854   :  { %650 = vrot.lane.b32.xlu2 %v1514_v46, %s1806_s12 }
 0x8ae   :  { %v651_v48 = vpop.permute.xlu2 %650 }
 0x8af   :  { %v653_v50 = vmul.f32 %v651_v48, %v648_v47 }
 0x8b1   :  { %v2029_v51 = vadd.f32 %v654_v49, %v653_v50 }
 0x8b3   :  { %721 = vrot.lane.b32.xlu1 %v2029_v51, %s1806_s12 }
 0x8b6   :  { %v715_v53 = vpop.permute.xlu0 %714 }
 0x8b7   :  { %v717_v55 = vmul.f32 %v715_v53, %v712_v52 }
 0x8b9   :  { %v2034_v56 = vadd.f32 %v718_v54, %v717_v55 }
 0x8bb   :  { %727 = vrot.lane.b32.xlu2 %v2034_v56, %s1806_s12 }
 0x915   :  { %v728_v58 = vpop.permute.xlu2 %727 }
 0x916   :  { %731 = vst.msk [vmem:[#allocation16 + $0x8] sm:$0x3] %vm143_vm0, %v728_v58  ;;  %1431 = vmatmul.msk.f32.vlgmr.msra.gmra.mxu1 %vm159_vm1, %v728_v58  ;;  %v873_v58 = vld [vmem:[#allocation4 + $0xa] sm:$0x3] }
 0x925   :  { %v722_v61 = vpop.permute.xlu1 %721 }
 0x926   :  { %725 = vst.msk [vmem:[#allocation15 + $0x6] sm:$0x3] %vm143_vm0, %v722_v61  ;;  %1429 = vmatmul.msk.f32.vlgmr.msra.gmra.mxu0 %vm159_vm1, %v722_v61 }
 0x993   :  { %v817_v62 = vpop.f32.mrf.mxu1 }
 0x994   :  { %v840_v63 = vadd.f32 %v817_v62, %v1941_v12  ;;  %v820_v59 = vadd.f32 %v817_v62, %v797_v6 }
 0x996   :  { %842 = vrot.lane.b32.xlu1 %v840_v63, %s1804_s5  ;;  %v1432_v4 = vmul.f32 -1.442695, %v820_v59  ;;  %v937_v63 = vld [vmem:[#allocation7 + $0x4] sm:$0x3] }
 0x998   :  { %1515 = vpow2.f32 %v1432_v4 }
 0x99e   :  { %v1516_v60 = vpop.eup %1515 }
 0x99f   :  { %v824_v1 = vadd.f32 1.0, %v1516_v60 }
 0x9a1   :  { %1517 = vrcp.f32 %v824_v1  ;;  %v836_v17 = vand.u32 2147483648, %v824_v1  ;;  %vm830_vm7 = vweird.f32 %v824_v1  ;;  %v834_v18 = vand.u32 2147483647, %v824_v1 }
 0x9a3   :  { %v753_v57 = vpop.f32.mrf.mxu0  ;;  %v837_v21 = vor.u32 1.1754944e-38, %v836_v17  ;;  %vm835_vm9 = vcmp.eq.f32.partialorder %v834_v18, 8.507059e+37 }
 0x9a4   :  { %v776_v0 = vadd.f32 %v753_v57, %v1937_v9  ;;  %v756_v8 = vadd.f32 %v753_v57, %v733_v7 }
 0x9a6   :  { %778 = vrot.lane.b32.xlu0 %v776_v0, %s1804_s5  ;;  %v1430_v2 = vmul.f32 -1.442695, %v756_v8 }
 0x9a7   :  { %v1518_v10 = vpop.eup %1517 }
 0x9a8   :  { %1519 = vpow2.f32 %v1430_v2  ;;  %v826_v13 = vmul.f32 %v1518_v10, %v824_v1  ;;  %vm831_vm6 = vweird.f32 %v1518_v10 }
 0x9a9   :  { %vm832_vm8 = vmor %vm830_vm7, %vm831_vm6 }
 0x9aa   :  { %v827_v3 = vsub.f32 1.0, %v826_v13 }
 0x9ac   :  { %v828_v15 = vmul.f32 %v1518_v10, %v827_v3 }
 0x9ae   :  { %v1520_v11 = vpop.eup %1519  ;;  %v829_v5 = vadd.f32 %v1518_v10, %v828_v15 }
 0x9af   :  { %v760_v14 = vadd.f32 1.0, %v1520_v11 }
 0x9b0   :  { %v833_v19 = vsel %vm832_vm8, %v1518_v10, %v829_v5 }
 0x9b1   :  { %1521 = vrcp.f32 %v760_v14  ;;  %v838_v23 = vsel %vm835_vm9, %v837_v21, %v833_v19  ;;  %v772_v28 = vand.u32 2147483648, %v760_v14  ;;  %vm766_vm11 = vweird.f32 %v760_v14 }
 0x9b2   :  { %v770_v29 = vand.u32 2147483647, %v760_v14  ;;  %v852_v41 = vsub.f32 1.0, %v838_v23  ;;  %v858_v43 = vmul.f32 %v838_v23, %v2034_v56 }
 0x9b3   :  { %v773_v31 = vor.u32 1.1754944e-38, %v772_v28 }
 0x9b4   :  { %vm771_vm13 = vcmp.eq.f32.partialorder %v770_v29, 8.507059e+37 }
 0x9b7   :  { %v1522_v16 = vpop.eup %1521 }
 0x9b8   :  { %v762_v20 = vmul.f32 %v1522_v16, %v760_v14  ;;  %vm767_vm10 = vweird.f32 %v1522_v16 }
 0x9b9   :  { %vm768_vm12 = vmor %vm766_vm11, %vm767_vm10 }
 0x9ba   :  { %v763_v25 = vsub.f32 1.0, %v762_v20 }
 0x9bc   :  { %v764_v26 = vmul.f32 %v1522_v16, %v763_v25 }
 0x9be   :  { %v765_v27 = vadd.f32 %v1522_v16, %v764_v26 }
 0x9c0   :  { %v769_v30 = vsel %vm768_vm12, %v1522_v16, %v765_v27 }
 0x9c1   :  { %v774_v33 = vsel %vm771_vm13, %v773_v31, %v769_v30 }
 0x9c2   :  { %v788_v46 = vsub.f32 1.0, %v774_v33  ;;  %v794_v48 = vmul.f32 %v774_v33, %v2029_v51 }
 0xa08   :  { %v843_v22 = vpop.permute.xlu1 %842 }
 0xa09   :  { %v845_v24 = vmul.f32 %v843_v22, %v838_v23 }
 0xa0b   :  { %847 = vrot.lane.b32.xlu0 %v845_v24, %s1794_s22 }
 0xa18   :  { %v779_v32 = vpop.permute.xlu0 %778 }
 0xa19   :  { %v781_v34 = vmul.f32 %v779_v32, %v774_v33 }
 0xa1b   :  { %783 = vrot.lane.b32.xlu2 %v781_v34, %s1794_s22 }
 0xa75   :  { %v784_v35 = vpop.permute.xlu2 %783 }
 0xa76   :  { %v786_v36 = vadd.f32 %v784_v35, %v733_v7 }
 0xa78   :  { %1523 = vtanh.f32 %v786_v36 }
 0xa7d   :  { %v848_v37 = vpop.permute.xlu0 %847 }
 0xa7e   :  { %v1524_v38 = vpop.eup %1523  ;;  %v850_v39 = vadd.f32 %v848_v37, %v797_v6 }
 0xa7f   :  { %790 = vrot.lane.b32.xlu1 %v1524_v38, %s1806_s12 }
 0xa80   :  { %1525 = vtanh.f32 %v850_v39 }
 0xa86   :  { %v1526_v40 = vpop.eup %1525 }
 0xa87   :  { %854 = vrot.lane.b32.xlu2 %v1526_v40, %s1806_s12 }
 0xae1   :  { %v855_v42 = vpop.permute.xlu2 %854 }
 0xae2   :  { %v857_v44 = vmul.f32 %v855_v42, %v852_v41 }
 0xae4   :  { %v2051_v45 = vadd.f32 %v858_v43, %v857_v44 }
 0xae6   :  { %867 = vrot.lane.b32.xlu1 %v2051_v45, %s1806_s12 }
 0xaf1   :  { %v791_v47 = vpop.permute.xlu1 %790 }
 0xaf2   :  { %v793_v49 = vmul.f32 %v791_v47, %v788_v46 }
 0xaf4   :  { %v2056_v50 = vadd.f32 %v794_v48, %v793_v49 }
 0xaf6   :  { %861 = vrot.lane.b32.xlu0 %v2056_v50, %s1806_s12 }
 0xb58   :  { %v868_v52 = vpop.permute.xlu1 %867 }
 0xb59   :  { %871 = vst.msk [vmem:[#allocation16 + $0x6] sm:$0x3] %vm143_vm0, %v868_v52  ;;  %1435 = vmatmul.msk.f32.vlgmr.msra.gmra.mxu3 %vm159_vm1, %v868_v52  ;;  %v1077_v52 = vld [vmem:[#allocation7 + $0x2] sm:$0x3] }
 0xb68   :  { %v862_v53 = vpop.permute.xlu0 %861 }
 0xb69   :  { %865 = vst.msk [vmem:[#allocation15 + $0x8] sm:$0x3] %vm143_vm0, %v862_v53  ;;  %1433 = vmatmul.msk.f32.vlgmr.msra.gmra.mxu2 %vm159_vm1, %v862_v53 }
 0xbdc   :  { %v957_v54 = vpop.f32.mrf.mxu3 }
 0xbdd   :  { %v980_v55 = vadd.f32 %v957_v54, %v1941_v12  ;;  %v960_v57 = vadd.f32 %v957_v54, %v937_v63 }
 0xbdf   :  { %982 = vrot.lane.b32.xlu0 %v980_v55, %s1804_s5  ;;  %v1436_v0 = vmul.f32 -1.442695, %v960_v57  ;;  %v1013_v55 = vld [vmem:[#allocation4 + $0xc] sm:$0x3] }
 0xbec   :  { %v893_v51 = vpop.f32.mrf.mxu2 }
 0xbed   :  { %v916_v56 = vadd.f32 %v893_v51, %v1937_v9  ;;  %v896_v61 = vadd.f32 %v893_v51, %v873_v58 }
 0xbef   :  { %918 = vrot.lane.b32.xlu2 %v916_v56, %s1804_s5  ;;  %v1434_v62 = vmul.f32 -1.442695, %v896_v61 }
 0xbf1   :  { %1527 = vpow2.f32 %v1434_v62 }
 0xbf2   :  { %1529 = vpow2.f32 %v1436_v0 }
 0xbf7   :  { %v1528_v6 = vpop.eup %1527 }
 0xbf8   :  { %v900_v59 = vadd.f32 1.0, %v1528_v6  ;;  %v1530_v4 = vpop.eup %1529 }
 0xbf9   :  { %v964_v7 = vadd.f32 1.0, %v1530_v4 }
 0xbfa   :  { %1531 = vrcp.f32 %v900_v59  ;;  %v912_v3 = vand.u32 2147483648, %v900_v59  ;;  %vm906_vm15 = vweird.f32 %v900_v59  ;;  %v910_v15 = vand.u32 2147483647, %v900_v59 }
 0xbfb   :  { %1533 = vrcp.f32 %v964_v7  ;;  %v976_v22 = vand.u32 2147483648, %v964_v7  ;;  %vm970_vm5 = vweird.f32 %v964_v7  ;;  %v974_v23 = vand.u32 2147483647, %v964_v7 }
 0xbfc   :  { %v913_v17 = vor.u32 1.1754944e-38, %v912_v3  ;;  %vm911_vm3 = vcmp.eq.f32.partialorder %v910_v15, 8.507059e+37 }
 0xbfd   :  { %v977_v25 = vor.u32 1.1754944e-38, %v976_v22  ;;  %vm975_vm7 = vcmp.eq.f32.partialorder %v974_v23, 8.507059e+37 }
 0xc00   :  { %v1532_v60 = vpop.eup %1531 }
 0xc01   :  { %v902_v8 = vmul.f32 %v1532_v60, %v900_v59  ;;  %v1534_v2 = vpop.eup %1533  ;;  %vm907_vm14 = vweird.f32 %v1532_v60 }
 0xc02   :  { %v966_v11 = vmul.f32 %v1534_v2, %v964_v7  ;;  %vm908_vm2 = vmor %vm906_vm15, %vm907_vm14  ;;  %vm971_vm4 = vweird.f32 %v1534_v2 }
 0xc03   :  { %v903_v1 = vsub.f32 1.0, %v902_v8  ;;  %vm972_vm6 = vmor %vm970_vm5, %vm971_vm4 }
 0xc04   :  { %v967_v14 = vsub.f32 1.0, %v966_v11 }
 0xc05   :  { %v904_v10 = vmul.f32 %v1532_v60, %v903_v1 }
 0xc06   :  { %v968_v16 = vmul.f32 %v1534_v2, %v967_v14 }
 0xc07   :  { %v905_v13 = vadd.f32 %v1532_v60, %v904_v10 }
 0xc08   :  { %v969_v21 = vadd.f32 %v1534_v2, %v968_v16 }
 0xc09   :  { %v909_v5 = vsel %vm908_vm2, %v1532_v60, %v905_v13 }
 0xc0a   :  { %v914_v18 = vsel %vm911_vm3, %v913_v17, %v909_v5  ;;  %v973_v24 = vsel %vm972_vm6, %v1534_v2, %v969_v21 }
 0xc0b   :  { %v978_v27 = vsel %vm975_vm7, %v977_v25, %v973_v24  ;;  %v928_v40 = vsub.f32 1.0, %v914_v18  ;;  %v934_v42 = vmul.f32 %v914_v18, %v2056_v50 }
 0xc0c   :  { %v992_v35 = vsub.f32 1.0, %v978_v27  ;;  %v998_v37 = vmul.f32 %v978_v27, %v2051_v45 }
 0xc49   :  { %v919_v19 = vpop.permute.xlu2 %918 }
 0xc4a   :  { %v921_v20 = vmul.f32 %v919_v19, %v914_v18 }
 0xc4c   :  { %923 = vrot.lane.b32.xlu1 %v921_v20, %s1794_s22 }
 0xc51   :  { %v983_v26 = vpop.permute.xlu0 %982 }
 0xc52   :  { %v985_v28 = vmul.f32 %v983_v26, %v978_v27 }
 0xc54   :  { %987 = vrot.lane.b32.xlu2 %v985_v28, %s1794_s22 }
 0xcae   :  { %v988_v29 = vpop.permute.xlu2 %987 }
 0xcaf   :  { %v990_v30 = vadd.f32 %v988_v29, %v937_v63 }
 0xcb1   :  { %1535 = vtanh.f32 %v990_v30 }
 0xcb7   :  { %v1536_v31 = vpop.eup %1535 }
 0xcb8   :  { %994 = vrot.lane.b32.xlu1 %v1536_v31, %s1806_s12 }
 0xcbe   :  { %v924_v32 = vpop.permute.xlu1 %923 }
 0xcbf   :  { %v926_v33 = vadd.f32 %v924_v32, %v873_v58 }
 0xcc1   :  { %1537 = vtanh.f32 %v926_v33 }
 0xcc7   :  { %v1538_v34 = vpop.eup %1537 }
 0xcc8   :  { %930 = vrot.lane.b32.xlu0 %v1538_v34, %s1806_s12 }
 0xd2a   :  { %v995_v36 = vpop.permute.xlu1 %994 }
 0xd2b   :  { %v997_v38 = vmul.f32 %v995_v36, %v992_v35 }
 0xd2d   :  { %v2073_v39 = vadd.f32 %v998_v37, %v997_v38 }
 0xd2f   :  { %1007 = vrot.lane.b32.xlu0 %v2073_v39, %s1806_s12 }
 0xd3a   :  { %v931_v41 = vpop.permute.xlu0 %930 }
 0xd3b   :  { %v933_v43 = vmul.f32 %v931_v41, %v928_v40 }
 0xd3d   :  { %v2078_v44 = vadd.f32 %v934_v42, %v933_v43 }
 0xd3f   :  { %1001 = vrot.lane.b32.xlu2 %v2078_v44, %s1806_s12 }
 0xd99   :  { %v1002_v46 = vpop.permute.xlu2 %1001 }
 0xd9a   :  { %1005 = vst.msk [vmem:[#allocation15 + $0xa] sm:$0x3] %vm143_vm0, %v1002_v46  ;;  %1437 = vmatmul.msk.f32.vlgmr.msrb.gmra.mxu0 %vm159_vm1, %v1002_v46  ;;  %v1216_v46 = vld [vmem:[#allocation7] sm:$0x3] }
 0xda1   :  { %v1008_v45 = vpop.permute.xlu0 %1007 }
 0xda2   :  { %1011 = vst.msk [vmem:[#allocation16 + $0x4] sm:$0x3] %vm143_vm0, %v1008_v45  ;;  %1439 = vmatmul.msk.f32.vlgmr.msrb.gmra.mxu1 %vm159_vm1, %v1008_v45 }
 0xe17   :  { %v1033_v47 = vpop.f32.mrf.mxu0 }
 0xe18   :  { %v1056_v48 = vadd.f32 %v1033_v47, %v1937_v9  ;;  %v1036_v56 = vadd.f32 %v1033_v47, %v1013_v55 }
 0xe1a   :  { %1058 = vrot.lane.b32.xlu1 %v1056_v48, %s1804_s5  ;;  %v1438_v61 = vmul.f32 -1.442695, %v1036_v56  ;;  %v1153_v48 = vld [vmem:[#allocation4 + $0xe] sm:$0x3] }
 0xe1f   :  { %v1097_v49 = vpop.f32.mrf.mxu1 }
 0xe20   :  { %v1120_v50 = vadd.f32 %v1097_v49, %v1941_v12  ;;  %v1100_v53 = vadd.f32 %v1097_v49, %v1077_v52 }
 0xe22   :  { %1122 = vrot.lane.b32.xlu2 %v1120_v50, %s1804_s5  ;;  %v1440_v54 = vmul.f32 -1.442695, %v1100_v53 }
 0xe24   :  { %1539 = vpow2.f32 %v1440_v54 }
 0xe2a   :  { %v1540_v51 = vpop.eup %1539 }
 0xe2b   :  { %v1104_v58 = vadd.f32 1.0, %v1540_v51 }
 0xe2d   :  { %1541 = vrcp.f32 %v1104_v58  ;;  %v1116_v60 = vand.u32 2147483648, %v1104_v58  ;;  %vm1110_vm9 = vweird.f32 %v1104_v58  ;;  %v1114_v8 = vand.u32 2147483647, %v1104_v58 }
 0xe2e   :  { %1543 = vpow2.f32 %v1438_v61 }
 0xe2f   :  { %v1117_v10 = vor.u32 1.1754944e-38, %v1116_v60  ;;  %vm1115_vm11 = vcmp.eq.f32.partialorder %v1114_v8, 8.507059e+37 }
 0xe33   :  { %v1542_v62 = vpop.eup %1541 }
 0xe34   :  { %v1544_v63 = vpop.eup %1543  ;;  %v1106_v57 = vmul.f32 %v1542_v62, %v1104_v58  ;;  %vm1111_vm8 = vweird.f32 %v1542_v62 }
 0xe35   :  { %v1040_v0 = vadd.f32 1.0, %v1544_v63  ;;  %vm1112_vm10 = vmor %vm1110_vm9, %vm1111_vm8 }
 0xe36   :  { %v1107_v6 = vsub.f32 1.0, %v1106_v57 }
 0xe37   :  { %1545 = vrcp.f32 %v1040_v0  ;;  %v1052_v16 = vand.u32 2147483648, %v1040_v0  ;;  %vm1046_vm13 = vweird.f32 %v1040_v0  ;;  %v1050_v17 = vand.u32 2147483647, %v1040_v0 }
 0xe38   :  { %v1108_v59 = vmul.f32 %v1542_v62, %v1107_v6 }
 0xe39   :  { %v1053_v19 = vor.u32 1.1754944e-38, %v1052_v16  ;;  %vm1051_vm15 = vcmp.eq.f32.partialorder %v1050_v17, 8.507059e+37 }
 0xe3a   :  { %v1109_v4 = vadd.f32 %v1542_v62, %v1108_v59 }
 0xe3c   :  { %v1113_v1 = vsel %vm1112_vm10, %v1542_v62, %v1109_v4 }
 0xe3d   :  { %v1546_v7 = vpop.eup %1545  ;;  %v1118_v11 = vsel %vm1115_vm11, %v1117_v10, %v1113_v1 }
 0xe3e   :  { %v1042_v2 = vmul.f32 %v1546_v7, %v1040_v0  ;;  %vm1047_vm12 = vweird.f32 %v1546_v7  ;;  %v1132_v34 = vsub.f32 1.0, %v1118_v11  ;;  %v1138_v36 = vmul.f32 %v1118_v11, %v2073_v39 }
 0xe3f   :  { %vm1048_vm14 = vmor %vm1046_vm13, %vm1047_vm12 }
 0xe40   :  { %v1043_v3 = vsub.f32 1.0, %v1042_v2 }
 0xe42   :  { %v1044_v15 = vmul.f32 %v1546_v7, %v1043_v3 }
 0xe44   :  { %v1045_v5 = vadd.f32 %v1546_v7, %v1044_v15 }
 0xe46   :  { %v1049_v18 = vsel %vm1048_vm14, %v1546_v7, %v1045_v5 }
 0xe47   :  { %v1054_v21 = vsel %vm1051_vm15, %v1053_v19, %v1049_v18 }
 0xe48   :  { %v1068_v29 = vsub.f32 1.0, %v1054_v21  ;;  %v1074_v31 = vmul.f32 %v1054_v21, %v2078_v44 }
 0xe7c   :  { %v1123_v13 = vpop.permute.xlu2 %1122 }
 0xe7d   :  { %v1125_v14 = vmul.f32 %v1123_v13, %v1118_v11 }
 0xe7f   :  { %1127 = vrot.lane.b32.xlu1 %v1125_v14, %s1794_s22 }
 0xe8c   :  { %v1059_v20 = vpop.permute.xlu1 %1058 }
 0xe8d   :  { %v1061_v22 = vmul.f32 %v1059_v20, %v1054_v21  ;;  %v1298_v21 = vld [vmem:[#allocation13 + $0x8] sm:$0xff] }
 0xe8e   :  { %1315 = vmatpush.msra.mxu0 %v1298_v21 }
 0xe8f   :  { %1063 = vrot.lane.b32.xlu0 %v1061_v22, %s1794_s22  ;;  %v1297_v22 = vld [vmem:[#allocation13] sm:$0xff] }
 0xe90   :  { %1316 = vmatpush.msra.mxu0 %v1297_v22 }
 0xef1   :  { %v1128_v23 = vpop.permute.xlu1 %1127 }
 0xef2   :  { %v1130_v24 = vadd.f32 %v1128_v23, %v1077_v52 }
 0xef4   :  { %1547 = vtanh.f32 %v1130_v24 }
 0xefa   :  { %v1548_v25 = vpop.eup %1547 }
 0xefb   :  { %1134 = vrot.lane.b32.xlu0 %v1548_v25, %s1806_s12 }
 0xf01   :  { %v1064_v26 = vpop.permute.xlu0 %1063 }
 0xf02   :  { %v1066_v27 = vadd.f32 %v1064_v26, %v1013_v55 }
 0xf04   :  { %1549 = vtanh.f32 %v1066_v27 }
 0xf0a   :  { %v1550_v28 = vpop.eup %1549 }
 0xf0b   :  { %1070 = vrot.lane.b32.xlu2 %v1550_v28, %s1806_s12 }
 0xf65   :  { %v1071_v30 = vpop.permute.xlu2 %1070 }
 0xf66   :  { %v1073_v32 = vmul.f32 %v1071_v30, %v1068_v29 }
 0xf68   :  { %v2095_v33 = vadd.f32 %v1074_v31, %v1073_v32 }
 0xf6a   :  { %1141 = vrot.lane.b32.xlu1 %v2095_v33, %s1806_s12 }
 0xf6d   :  { %v1135_v35 = vpop.permute.xlu0 %1134 }
 0xf6e   :  { %v1137_v37 = vmul.f32 %v1135_v35, %v1132_v34  ;;  %v1296_v34 = vld [vmem:[#allocation12 + $0x8] sm:$0xff]  ;;  %v1295_v35 = vld [vmem:[#allocation12] sm:$0xff] }
 0xf6f   :  { %1337 = vmatpush.msra.mxu1 %v1296_v34 }
 0xf70   :  { %v2100_v38 = vadd.f32 %v1138_v36, %v1137_v37 }
 0xf71   :  { %1338 = vmatpush.msra.mxu1 %v1295_v35 }
 0xf72   :  { %1147 = vrot.lane.b32.xlu2 %v2100_v38, %s1806_s12 }
 0xfcc   :  { %v1148_v40 = vpop.permute.xlu2 %1147 }
 0xfcd   :  { %1151 = vst.msk [vmem:[#allocation16 + $0x2] sm:$0x3] %vm143_vm0, %v1148_v40  ;;  %1443 = vmatmul.msk.f32.vlgmr.msrb.gmra.mxu3 %vm159_vm1, %v1148_v40 }
 0xfdc   :  { %v1142_v41 = vpop.permute.xlu1 %1141 }
 0xfdd   :  { %1145 = vst.msk [vmem:[#allocation15 + $0xc] sm:$0x3] %vm143_vm0, %v1142_v41  ;;  %1441 = vmatmul.msk.f32.vlgmr.msrb.gmra.mxu2 %vm159_vm1, %v1142_v41 }
0x1050   :  { %v1236_v42 = vpop.f32.mrf.mxu3 }
0x1051   :  { %v1259_v43 = vadd.f32 %v1236_v42, %v1941_v12  ;;  %v1239_v45 = vadd.f32 %v1236_v42, %v1216_v46 }
0x1053   :  { %1261 = vrot.lane.b32.xlu1 %v1259_v43, %s1804_s5  ;;  %v1444_v47 = vmul.f32 -1.442695, %v1239_v45 }
0x1055   :  { %1551 = vpow2.f32 %v1444_v47 }
0x105b   :  { %v1552_v49 = vpop.eup %1551 }
0x105c   :  { %v1243_v52 = vadd.f32 1.0, %v1552_v49 }
0x105e   :  { %1553 = vrcp.f32 %v1243_v52  ;;  %v1255_v62 = vand.u32 2147483648, %v1243_v52  ;;  %vm1249_vm3 = vweird.f32 %v1243_v52  ;;  %v1253_v63 = vand.u32 2147483647, %v1243_v52 }
0x1060   :  { %v1173_v39 = vpop.f32.mrf.mxu2  ;;  %v1256_v6 = vor.u32 1.1754944e-38, %v1255_v62  ;;  %vm1254_vm5 = vcmp.eq.f32.partialorder %v1253_v63, 8.507059e+37 }
0x1061   :  { %v1196_v44 = vadd.f32 %v1173_v39, %v1937_v9  ;;  %v1176_v50 = vadd.f32 %v1173_v39, %v1153_v48 }
0x1063   :  { %1198 = vrot.lane.b32.xlu0 %v1196_v44, %s1804_s5  ;;  %v1442_v53 = vmul.f32 -1.442695, %v1176_v50 }
0x1064   :  { %v1554_v54 = vpop.eup %1553 }
0x1065   :  { %1555 = vpow2.f32 %v1442_v53  ;;  %v1245_v55 = vmul.f32 %v1554_v54, %v1243_v52  ;;  %vm1250_vm2 = vweird.f32 %v1554_v54 }
0x1066   :  { %vm1251_vm4 = vmor %vm1249_vm3, %vm1250_vm2 }
0x1067   :  { %v1246_v56 = vsub.f32 1.0, %v1245_v55 }
0x1069   :  { %v1247_v9 = vmul.f32 %v1554_v54, %v1246_v56 }
0x106b   :  { %v1556_v12 = vpop.eup %1555  ;;  %v1248_v58 = vadd.f32 %v1554_v54, %v1247_v9 }
0x106c   :  { %v1180_v51 = vadd.f32 1.0, %v1556_v12 }
0x106d   :  { %v1252_v57 = vsel %vm1251_vm4, %v1554_v54, %v1248_v58 }
0x106e   :  { %1557 = vrcp.f32 %v1180_v51  ;;  %v1257_v4 = vsel %vm1254_vm5, %v1256_v6, %v1252_v57  ;;  %v1192_v2 = vand.u32 2147483648, %v1180_v51  ;;  %vm1186_vm7 = vweird.f32 %v1180_v51 }
0x106f   :  { %v1190_v10 = vand.u32 2147483647, %v1180_v51  ;;  %v1271_v23 = vsub.f32 1.0, %v1257_v4  ;;  %v1277_v25 = vmul.f32 %v1257_v4, %v2100_v38 }
0x1070   :  { %v1193_v13 = vor.u32 1.1754944e-38, %v1192_v2 }
0x1071   :  { %vm1191_vm9 = vcmp.eq.f32.partialorder %v1190_v10, 8.507059e+37 }
0x1074   :  { %v1558_v61 = vpop.eup %1557 }
0x1075   :  { %v1182_v0 = vmul.f32 %v1558_v61, %v1180_v51  ;;  %vm1187_vm6 = vweird.f32 %v1558_v61 }
0x1076   :  { %vm1188_vm8 = vmor %vm1186_vm7, %vm1187_vm6 }
0x1077   :  { %v1183_v60 = vsub.f32 1.0, %v1182_v0 }
0x1079   :  { %v1184_v8 = vmul.f32 %v1558_v61, %v1183_v60 }
0x107b   :  { %v1185_v1 = vadd.f32 %v1558_v61, %v1184_v8 }
0x107d   :  { %v1189_v11 = vsel %vm1188_vm8, %v1558_v61, %v1185_v1 }
0x107e   :  { %v1194_v3 = vsel %vm1191_vm9, %v1193_v13, %v1189_v11 }
0x107f   :  { %v1208_v28 = vsub.f32 1.0, %v1194_v3  ;;  %v1214_v30 = vmul.f32 %v1194_v3, %v2095_v33  ;;  %v1466_v33 = vld [vmem:[%s2153_s8] ss:$0 sm:$0xff] }
0x10c5   :  { %v1262_v59 = vpop.permute.xlu1 %1261 }
0x10c6   :  { %v1264_v7 = vmul.f32 %v1262_v59, %v1257_v4 }
0x10c8   :  { %1266 = vrot.lane.b32.xlu0 %v1264_v7, %s1794_s22 }
0x10d5   :  { %v1199_v14 = vpop.permute.xlu0 %1198 }
0x10d6   :  { %v1201_v15 = vmul.f32 %v1199_v14, %v1194_v3 }
0x10d8   :  { %1203 = vrot.lane.b32.xlu2 %v1201_v15, %s1794_s22 }
0x1132   :  { %v1204_v5 = vpop.permute.xlu2 %1203 }
0x1133   :  { %v1206_v16 = vadd.f32 %v1204_v5, %v1153_v48 }
0x1135   :  { %1559 = vtanh.f32 %v1206_v16 }
0x113a   :  { %v1267_v17 = vpop.permute.xlu0 %1266 }
0x113b   :  { %v1560_v18 = vpop.eup %1559  ;;  %v1269_v19 = vadd.f32 %v1267_v17, %v1216_v46 }
0x113c   :  { %1210 = vrot.lane.b32.xlu1 %v1560_v18, %s1806_s12 }
0x113d   :  { %1561 = vtanh.f32 %v1269_v19 }
0x1143   :  { %v1562_v20 = vpop.eup %1561 }
0x1144   :  { %1273 = vrot.lane.b32.xlu2 %v1562_v20, %s1806_s12 }
0x119e   :  { %v1274_v24 = vpop.permute.xlu2 %1273 }
0x119f   :  { %v1276_v26 = vmul.f32 %v1274_v24, %v1271_v23 }
0x11a1   :  { %v1278_v27 = vadd.f32 %v1277_v25, %v1276_v26 }
0x11a3   :  { %1286 = vrot.lane.b32.xlu1 %v1278_v27, %s1806_s12 }
0x11ae   :  { %v1211_v29 = vpop.permute.xlu1 %1210 }
0x11af   :  { %v1213_v31 = vmul.f32 %v1211_v29, %v1208_v28 }
0x11b1   :  { %v1215_v32 = vadd.f32 %v1214_v30, %v1213_v31 }
0x11b3   :  { %1280 = vrot.lane.b32.xlu0 %v1215_v32, %s1806_s12 }
0x1215   :  { %v1287_v36 = vpop.permute.xlu1 %1286 }
0x1216   :  { %1289 = vst.msk [vmem:[#allocation16] sm:$0x3] %vm143_vm0, %v1287_v36  ;;  %1445 = vmatmul.msk.f32.vlgmr.msra.gmra.mxu0 %vm159_vm1, %v1287_v36 }
0x1217   :  { %1291 = vst.msk [vmem:[#allocation3] sm:$0x3] %vm143_vm0, %v1287_v36  ;;  %1379 = dma.vmem_to_hbm [thread:$0]  %s1372_s14, 256, %s1374_s17, [#allocation17], %s1794_s22, %s1794_s22, %s1795_s23  }
0x1225   :  { %v1281_v37 = vpop.permute.xlu0 %1280 }
0x1226   :  { %1284 = vst.msk [vmem:[#allocation15 + $0xe] sm:$0x3] %vm143_vm0, %v1281_v37  ;;  %1446 = vmatmul.msk.f32.vlgmr.msra.gmra.mxu1 %vm159_vm1, %v1281_v37 }
0x1227   :  { %1290 = vst.msk [vmem:[#allocation2] sm:$0x3] %vm143_vm0, %v1281_v37  ;;  %1362 = dma.vmem_to_hbm [thread:$0]  %s1355_s20, 256, %s1357_s19, [#allocation6], %s1794_s22, %s1794_s22, %s1795_s23  }
0x1293   :  { %v1318_v38 = vpop.f32.mrf.mxu0 }
0x12a3   :  { %v1340_v40 = vpop.f32.mrf.mxu1 }
0x12a4   :  { %v1341_v41 = vadd.f32 %v1340_v40, %v1318_v38 }
0x12a6   :  { %v1347_v42 = vadd.f32 %v1466_v33, %v1341_v41 }
0x12a8   :  { %1563 = vtanh.f32 %v1347_v42 }
0x12ae   :  { %v1564_v43 = vpop.eup %1563 }
0x12af   :  { %1349 = vst.msk [vmem:[#allocation18] sm:$0x3] %vm143_vm0, %v1564_v43 }
0x12b0   :  { %1390 = dma.vmem_to_hbm [thread:$0]  %s1386_s25, 32, %s1388_s26, [#allocation17]  }
0x12b1   :  { %1789 = dma.done.wait [#allocation6], 256  }
0x12b2   :  { %1790 = vsyncadd [#allocation6], 4294967040 }
0x12b3   :  { %1791 = dma.done.wait [#allocation17], 288  }
0x12b4   :  { %1792 = vsyncadd [#allocation17], 4294967008 }
0x12b5   :  { %1403 = vsyncpa [#allocation5], 1 }
0x12b6   :  { %1404 = vsyncpa [#allocation8], 1 }
0x12b7   :  { %1405 = vsyncpa [#allocation11], 1 }
0x12b8   :  { %1406 = vsyncpa [#allocation14], 1 }
0x12b9   :  { %1407 = vsyncpa [#allocation6], 1 }
0x12ba   :  { %1408 = vsyncpa [#allocation17], 1 }

</bundles_post_ra>
